<compile_context>
chip_gen: v5e
topology: v5e:2x2
jax: 0.10.0
libtpu: 0.0.40
codegen_flags: <defaults>
</compile_context>

<pallas_src>
import functools

import jax
import jax.numpy as jnp
import numpy as np
from jax.experimental import pallas as pl
from jax.experimental.pallas import tpu as pltpu


def _encoder_conv_kernel(*refs, kernel_sizes, B_pad, L_pad, C, D_out_pad):
    """Fused embedding + multi-kernel-size conv (tap-accumulated) + ReLU + max + concat.

    refs = (text_ref, table_ref, w_0..w_{n-1}, b_0..b_{n-1}, o_ref)
      text_ref : (B_pad*L_pad, 1) int32   (padded ids; sentinel id >= V => zero embedding)
      table_ref: (V, D) f32
      w_i      : (k_i, D, C) f32          (torch (C,1,k,D) permuted to (k,D,C))
      b_i      : (1, C) f32
      o_ref    : (B_pad, D_out_pad) f32   (lane/sublane-dense output tile)
    """
    nks = len(kernel_sizes)
    text_ref, table_ref = refs[0], refs[1]
    w_refs = refs[2:2 + nks]
    b_refs = refs[2 + nks:2 + 2 * nks]
    o_ref = refs[2 + 2 * nks]

    V, D = table_ref.shape
    rows = B_pad * L_pad

    # ---- embedding lookup as one-hot @ table (gather-free, MXU path) ----
    # Sentinel ids (>= V) injected by the wrapper produce all-zero one-hot rows, so
    # padded batch rows / padded sequence positions embed to zeros with no concat.
    ids = text_ref[...]                                            # (rows, 1) int32
    iota = jax.lax.broadcasted_iota(jnp.int32, (rows, V), 1)       # lane iota
    onehot = jnp.where(iota == ids, jnp.float32(1.0), jnp.float32(0.0))
    emb = jnp.dot(onehot, table_ref[...],
                  preferred_element_type=jnp.float32)              # (rows, D)
    emb = emb.reshape(B_pad, L_pad, D)

    # ---- per kernel size: tap-accumulated conv + bias + ReLU + max over positions ----
    outs = []
    for idx, k in enumerate(kernel_sizes):
        P = L_pad - k + 1                                          # valid conv positions
        acc = None
        for i in range(k):
            # tap i: shifted window (B_pad, P, D) -> (B_pad*P, D) @ (D, C)
            win = emb[:, i:i + P, :].reshape(B_pad * P, D)
            term = jnp.dot(win, w_refs[idx][i],
                           preferred_element_type=jnp.float32)     # (B_pad*P, C)
            acc = term if acc is None else acc + term              # MRB-chained on v7x
        acc = jnp.maximum(acc + b_refs[idx][...], 0.0)             # bias + ReLU (bias loaded once)
        outs.append(jnp.max(acc.reshape(B_pad, P, C), axis=1))     # (B_pad, C) global max-pool

    # Lane-pad with zeros so the single store is a full unmasked (B_pad, D_out_pad) tile.
    pad = D_out_pad - nks * C
    if pad > 0:
        outs.append(jnp.zeros((B_pad, pad), jnp.float32))
    o_ref[...] = jnp.concatenate(outs, axis=1)


def encoder_convolution_forward(text, params, *, kernel_sizes):
    """hidden = EncoderConvolution(...)(text).  (Dropout(0.2) exists in __init__ but is
    never applied in forward(), so it is intentionally omitted.)"""
    B, L = text.shape
    V, D = params["embedding"].shape
    C = params["conv_b"][0].shape[-1]
    nks = len(kernel_sizes)
    dimension = C * nks

    # Padding handled entirely in the wrapper:
    #  * sequence padded to L_pad = max(L, max(kernel_sizes)) with sentinel ids
    #    (PyTorch pads with uninitialized memory; deterministic zeros is our choice),
    #  * batch padded to a full sublane group (multiple of 8),
    #  * output lanes padded to a multiple of 128 -> fully dense store, sliced off here.
    L_pad = max(L, max(kernel_sizes))
    B_pad = max(8, ((B + 7) // 8) * 8)
    D_out_pad = ((dimension + 127) // 128) * 128

    sentinel = jnp.int32(V)                                        # one-hot row == 0
    text_pad = jnp.full((B_pad, L_pad), sentinel, dtype=jnp.int32)
    text_pad = text_pad.at[:B, :L].set(text.astype(jnp.int32))
    text2 = text_pad.reshape(B_pad * L_pad, 1)

    args = [text2, params["embedding"]]
    in_specs = [pl.BlockSpec((B_pad * L_pad, 1), lambda i: (0, 0)),
                pl.BlockSpec((V, D), lambda i: (0, 0))]
    for k, w in zip(kernel_sizes, params["conv_w"]):
        args.append(w)                                             # (k, D, C)
        in_specs.append(pl.BlockSpec((k, D, C), lambda i: (0, 0, 0)))
    for b in params["conv_b"]:
        args.append(b.reshape(1, C))
        in_specs.append(pl.BlockSpec((1, C), lambda i: (0, 0)))

    kernel = functools.partial(_encoder_conv_kernel,
                               kernel_sizes=tuple(kernel_sizes),
                               B_pad=B_pad, L_pad=L_pad, C=C,
                               D_out_pad=D_out_pad)

    out = pl.pallas_call(
        kernel,
        out_shape=jax.ShapeDtypeStruct((B_pad, D_out_pad), jnp.float32),
        grid=(1,),
        in_specs=in_specs,
        out_specs=pl.BlockSpec((B_pad, D_out_pad), lambda i: (0, 0)),
        compiler_params=pltpu.CompilerParams(
            dimension_semantics=("arbitrary",)),
    )(*args)
    return out[:B, :dimension]


def init_params(key, generators, letter_dimension, dimension, kernel_sizes):
    """Deterministic synthetic parameters (shapes match the torch module).

    conv_w[i] has shape (k, D, C) == torch Conv2d weight (C, 1, k, D) permuted to
    (k, D, C)."""
    n_out = dimension // len(kernel_sizes)        # kernel_num // len(kernel_sizes)
    keys = jax.random.split(key, 1 + 2 * len(kernel_sizes))
    # trainable-embedding mode (letter_dimension != generators): Embedding(1+2g, D)
    emb = jax.random.normal(
        keys[0], (1 + 2 * generators, letter_dimension), jnp.float32)
    conv_w, conv_b = [], []
    for idx, k in enumerate(kernel_sizes):
        fan_in = k * letter_dimension             # in_channels(=1) * k * D
        bound = 1.0 / np.sqrt(fan_in)
        w = jax.random.uniform(keys[1 + 2 * idx],
                               (k, letter_dimension, n_out),
                               jnp.float32, -bound, bound)
        b = jax.random.uniform(keys[2 + 2 * idx], (n_out,),
                               jnp.float32, -bound, bound)
        conv_w.append(w)
        conv_b.append(b)
    return {"embedding": emb, "conv_w": conv_w, "conv_b": conv_b}


if __name__ == "__main__":
    generators = 4
    letter_dimension = 8      # != generators -> trainable-embedding mode
    dimension = 32
    kernel_sizes = [3, 5]
    B, L = 2, 8

    key = jax.random.PRNGKey(0)
    k_text, k_params = jax.random.split(key)
    text = jax.random.randint(k_text, (B, L), 0, 1 + 2 * generators,
                              dtype=jnp.int32)
    params = init_params(k_params, generators, letter_dimension, dimension,
                         kernel_sizes)

    hidden = encoder_convolution_forward(text, params, kernel_sizes=kernel_sizes)
    hidden = jax.block_until_ready(hidden)
    assert hidden.shape == (B, dimension), hidden.shape

    # pure-JAX reference (same math, no Pallas) for a correctness check
    emb = jnp.take(params["embedding"], text, axis=0)
    refs = []
    for k, w, b in zip(kernel_sizes, params["conv_w"], params["conv_b"]):
        P = L - k + 1
        patches = jnp.stack([emb[:, i:i + P, :] for i in range(k)], axis=2)
        conv = jnp.einsum("bpkd,kdc->bpc", patches, w) + b
        refs.append(jnp.max(jax.nn.relu(conv), axis=1))
    ref = jnp.concatenate(refs, axis=1)
    np.testing.assert_allclose(np.asarray(hidden), np.asarray(ref),
                               rtol=1e-5, atol=1e-5)
    print("KERNEL_OK")
</pallas_src>

<mosaic_0001>
module attributes {stable_mosaic.version = 11 : i64} {
  func.func @_encoder_conv_kernel(%arg0: i32, %arg1: memref<64x1xi32, #tpu.memory_space<vmem>>, %arg2: memref<9x8xf32, #tpu.memory_space<vmem>>, %arg3: memref<3x8x16xf32, #tpu.memory_space<vmem>>, %arg4: memref<5x8x16xf32, #tpu.memory_space<vmem>>, %arg5: memref<1x16xf32, #tpu.memory_space<vmem>>, %arg6: memref<1x16xf32, #tpu.memory_space<vmem>>, %arg7: memref<8x128xf32, #tpu.memory_space<vmem>>) attributes {dimension_semantics = [#tpu.dimension_semantics<arbitrary>], iteration_bounds = array<i64: 1>, scalar_prefetch = 0 : i64, scratch_operands = 0 : i64, tpu.core_type = #tpu.core_type<tc>, window_params = [{pipeline_mode = #tpu.pipeline_mode<synchronous>, transform_indices = @transform_0, window_bounds = array<i64: 64, 1>}, {pipeline_mode = #tpu.pipeline_mode<synchronous>, transform_indices = @transform_1, window_bounds = array<i64: 9, 8>}, {pipeline_mode = #tpu.pipeline_mode<synchronous>, transform_indices = @transform_2, window_bounds = array<i64: 3, 8, 16>}, {pipeline_mode = #tpu.pipeline_mode<synchronous>, transform_indices = @transform_3, window_bounds = array<i64: 5, 8, 16>}, {pipeline_mode = #tpu.pipeline_mode<synchronous>, transform_indices = @transform_4, window_bounds = array<i64: 1, 16>}, {pipeline_mode = #tpu.pipeline_mode<synchronous>, transform_indices = @transform_5, window_bounds = array<i64: 1, 16>}, {pipeline_mode = #tpu.pipeline_mode<synchronous>, transform_indices = @transform_6, window_bounds = array<i64: 8, 128>}]} {
    %c0 = arith.constant 0 : index
    %c0_0 = arith.constant 0 : index
    %0 = vector.load %arg1[%c0, %c0_0] : memref<64x1xi32, #tpu.memory_space<vmem>>, vector<64x1xi32>
    %1 = tpu.iota {dimensions = array<i32: 1>} : vector<64x9xi32>
    %2 = vector.broadcast %0 : vector<64x1xi32> to vector<64x9xi32>
    %3 = arith.cmpi eq, %1, %2 : vector<64x9xi32>
    %cst = arith.constant 1.000000e+00 : f32
    %cst_1 = arith.constant 0.000000e+00 : f32
    %4 = vector.broadcast %cst : f32 to vector<64x9xf32>
    %5 = vector.broadcast %cst_1 : f32 to vector<64x9xf32>
    %6 = arith.select %3, %4, %5 : vector<64x9xi1>, vector<64x9xf32>
    %c0_2 = arith.constant 0 : index
    %c0_3 = arith.constant 0 : index
    %7 = vector.load %arg2[%c0_2, %c0_3] : memref<9x8xf32, #tpu.memory_space<vmem>>, vector<9x8xf32>
    %cst_4 = arith.constant dense<0.000000e+00> : vector<64x8xf32>
    %8 = tpu.matmul %6, %7, %cst_4 {dimension_numbers = #tpu.dot_dimension_numbers<[1], [0], [0], [1], [0, 0, 1, 1], [], []>} : vector<64x9xf32>, vector<9x8xf32>, vector<64x8xf32> -> vector<64x8xf32>
    %9 = vector.shape_cast %8 : vector<64x8xf32> to vector<8x8x8xf32>
    %10 = vector.extract_strided_slice %9 {offsets = [0, 0, 0], sizes = [8, 6, 8], strides = [1, 1, 1]} : vector<8x8x8xf32> to vector<8x6x8xf32>
    %11 = vector.shape_cast %10 : vector<8x6x8xf32> to vector<48x8xf32>
    %c0_5 = arith.constant 0 : index
    %c0_6 = arith.constant 0 : index
    %c0_7 = arith.constant 0 : index
    %12 = vector.load %arg3[%c0_5, %c0_6, %c0_7] : memref<3x8x16xf32, #tpu.memory_space<vmem>>, vector<1x8x16xf32>
    %13 = vector.shape_cast %12 : vector<1x8x16xf32> to vector<8x16xf32>
    %cst_8 = arith.constant dense<0.000000e+00> : vector<48x16xf32>
    %14 = tpu.matmul %11, %13, %cst_8 {dimension_numbers = #tpu.dot_dimension_numbers<[1], [0], [0], [1], [0, 0, 1, 1], [], []>} : vector<48x8xf32>, vector<8x16xf32>, vector<48x16xf32> -> vector<48x16xf32>
    %15 = vector.extract_strided_slice %9 {offsets = [0, 1, 0], sizes = [8, 6, 8], strides = [1, 1, 1]} : vector<8x8x8xf32> to vector<8x6x8xf32>
    %16 = vector.shape_cast %15 : vector<8x6x8xf32> to vector<48x8xf32>
    %c1 = arith.constant 1 : index
    %c0_9 = arith.constant 0 : index
    %c0_10 = arith.constant 0 : index
    %17 = vector.load %arg3[%c1, %c0_9, %c0_10] : memref<3x8x16xf32, #tpu.memory_space<vmem>>, vector<1x8x16xf32>
    %18 = vector.shape_cast %17 : vector<1x8x16xf32> to vector<8x16xf32>
    %cst_11 = arith.constant dense<0.000000e+00> : vector<48x16xf32>
    %19 = tpu.matmul %16, %18, %cst_11 {dimension_numbers = #tpu.dot_dimension_numbers<[1], [0], [0], [1], [0, 0, 1, 1], [], []>} : vector<48x8xf32>, vector<8x16xf32>, vector<48x16xf32> -> vector<48x16xf32>
    %20 = arith.addf %14, %19 : vector<48x16xf32>
    %21 = vector.extract_strided_slice %9 {offsets = [0, 2, 0], sizes = [8, 6, 8], strides = [1, 1, 1]} : vector<8x8x8xf32> to vector<8x6x8xf32>
    %22 = vector.shape_cast %21 : vector<8x6x8xf32> to vector<48x8xf32>
    %c2 = arith.constant 2 : index
    %c0_12 = arith.constant 0 : index
    %c0_13 = arith.constant 0 : index
    %23 = vector.load %arg3[%c2, %c0_12, %c0_13] : memref<3x8x16xf32, #tpu.memory_space<vmem>>, vector<1x8x16xf32>
    %24 = vector.shape_cast %23 : vector<1x8x16xf32> to vector<8x16xf32>
    %cst_14 = arith.constant dense<0.000000e+00> : vector<48x16xf32>
    %25 = tpu.matmul %22, %24, %cst_14 {dimension_numbers = #tpu.dot_dimension_numbers<[1], [0], [0], [1], [0, 0, 1, 1], [], []>} : vector<48x8xf32>, vector<8x16xf32>, vector<48x16xf32> -> vector<48x16xf32>
    %26 = arith.addf %20, %25 : vector<48x16xf32>
    %c0_15 = arith.constant 0 : index
    %c0_16 = arith.constant 0 : index
    %27 = vector.load %arg5[%c0_15, %c0_16] : memref<1x16xf32, #tpu.memory_space<vmem>>, vector<1x16xf32>
    %28 = vector.broadcast %27 : vector<1x16xf32> to vector<48x16xf32>
    %29 = arith.addf %26, %28 : vector<48x16xf32>
    %cst_17 = arith.constant 0.000000e+00 : f32
    %30 = vector.broadcast %cst_17 : f32 to vector<48x16xf32>
    %31 = arith.maximumf %29, %30 : vector<48x16xf32>
    %32 = vector.shape_cast %31 : vector<48x16xf32> to vector<8x6x16xf32>
    %cst_18 = arith.constant dense<0xFF800000> : vector<8x16xf32>
    %33 = vector.multi_reduction <maximumf>, %32, %cst_18 [1] : vector<8x6x16xf32> to vector<8x16xf32>
    %34 = vector.extract_strided_slice %9 {offsets = [0, 0, 0], sizes = [8, 4, 8], strides = [1, 1, 1]} : vector<8x8x8xf32> to vector<8x4x8xf32>
    %35 = vector.shape_cast %34 : vector<8x4x8xf32> to vector<32x8xf32>
    %c0_19 = arith.constant 0 : index
    %c0_20 = arith.constant 0 : index
    %c0_21 = arith.constant 0 : index
    %36 = vector.load %arg4[%c0_19, %c0_20, %c0_21] : memref<5x8x16xf32, #tpu.memory_space<vmem>>, vector<1x8x16xf32>
    %37 = vector.shape_cast %36 : vector<1x8x16xf32> to vector<8x16xf32>
    %cst_22 = arith.constant dense<0.000000e+00> : vector<32x16xf32>
    %38 = tpu.matmul %35, %37, %cst_22 {dimension_numbers = #tpu.dot_dimension_numbers<[1], [0], [0], [1], [0, 0, 1, 1], [], []>} : vector<32x8xf32>, vector<8x16xf32>, vector<32x16xf32> -> vector<32x16xf32>
    %39 = vector.extract_strided_slice %9 {offsets = [0, 1, 0], sizes = [8, 4, 8], strides = [1, 1, 1]} : vector<8x8x8xf32> to vector<8x4x8xf32>
    %40 = vector.shape_cast %39 : vector<8x4x8xf32> to vector<32x8xf32>
    %c1_23 = arith.constant 1 : index
    %c0_24 = arith.constant 0 : index
    %c0_25 = arith.constant 0 : index
    %41 = vector.load %arg4[%c1_23, %c0_24, %c0_25] : memref<5x8x16xf32, #tpu.memory_space<vmem>>, vector<1x8x16xf32>
    %42 = vector.shape_cast %41 : vector<1x8x16xf32> to vector<8x16xf32>
    %cst_26 = arith.constant dense<0.000000e+00> : vector<32x16xf32>
    %43 = tpu.matmul %40, %42, %cst_26 {dimension_numbers = #tpu.dot_dimension_numbers<[1], [0], [0], [1], [0, 0, 1, 1], [], []>} : vector<32x8xf32>, vector<8x16xf32>, vector<32x16xf32> -> vector<32x16xf32>
    %44 = arith.addf %38, %43 : vector<32x16xf32>
    %45 = vector.extract_strided_slice %9 {offsets = [0, 2, 0], sizes = [8, 4, 8], strides = [1, 1, 1]} : vector<8x8x8xf32> to vector<8x4x8xf32>
    %46 = vector.shape_cast %45 : vector<8x4x8xf32> to vector<32x8xf32>
    %c2_27 = arith.constant 2 : index
    %c0_28 = arith.constant 0 : index
    %c0_29 = arith.constant 0 : index
    %47 = vector.load %arg4[%c2_27, %c0_28, %c0_29] : memref<5x8x16xf32, #tpu.memory_space<vmem>>, vector<1x8x16xf32>
    %48 = vector.shape_cast %47 : vector<1x8x16xf32> to vector<8x16xf32>
    %cst_30 = arith.constant dense<0.000000e+00> : vector<32x16xf32>
    %49 = tpu.matmul %46, %48, %cst_30 {dimension_numbers = #tpu.dot_dimension_numbers<[1], [0], [0], [1], [0, 0, 1, 1], [], []>} : vector<32x8xf32>, vector<8x16xf32>, vector<32x16xf32> -> vector<32x16xf32>
    %50 = arith.addf %44, %49 : vector<32x16xf32>
    %51 = vector.extract_strided_slice %9 {offsets = [0, 3, 0], sizes = [8, 4, 8], strides = [1, 1, 1]} : vector<8x8x8xf32> to vector<8x4x8xf32>
    %52 = vector.shape_cast %51 : vector<8x4x8xf32> to vector<32x8xf32>
    %c3 = arith.constant 3 : index
    %c0_31 = arith.constant 0 : index
    %c0_32 = arith.constant 0 : index
    %53 = vector.load %arg4[%c3, %c0_31, %c0_32] : memref<5x8x16xf32, #tpu.memory_space<vmem>>, vector<1x8x16xf32>
    %54 = vector.shape_cast %53 : vector<1x8x16xf32> to vector<8x16xf32>
    %cst_33 = arith.constant dense<0.000000e+00> : vector<32x16xf32>
    %55 = tpu.matmul %52, %54, %cst_33 {dimension_numbers = #tpu.dot_dimension_numbers<[1], [0], [0], [1], [0, 0, 1, 1], [], []>} : vector<32x8xf32>, vector<8x16xf32>, vector<32x16xf32> -> vector<32x16xf32>
    %56 = arith.addf %50, %55 : vector<32x16xf32>
    %57 = vector.extract_strided_slice %9 {offsets = [0, 4, 0], sizes = [8, 4, 8], strides = [1, 1, 1]} : vector<8x8x8xf32> to vector<8x4x8xf32>
    %58 = vector.shape_cast %57 : vector<8x4x8xf32> to vector<32x8xf32>
    %c4 = arith.constant 4 : index
    %c0_34 = arith.constant 0 : index
    %c0_35 = arith.constant 0 : index
    %59 = vector.load %arg4[%c4, %c0_34, %c0_35] : memref<5x8x16xf32, #tpu.memory_space<vmem>>, vector<1x8x16xf32>
    %60 = vector.shape_cast %59 : vector<1x8x16xf32> to vector<8x16xf32>
    %cst_36 = arith.constant dense<0.000000e+00> : vector<32x16xf32>
    %61 = tpu.matmul %58, %60, %cst_36 {dimension_numbers = #tpu.dot_dimension_numbers<[1], [0], [0], [1], [0, 0, 1, 1], [], []>} : vector<32x8xf32>, vector<8x16xf32>, vector<32x16xf32> -> vector<32x16xf32>
    %62 = arith.addf %56, %61 : vector<32x16xf32>
    %c0_37 = arith.constant 0 : index
    %c0_38 = arith.constant 0 : index
    %63 = vector.load %arg6[%c0_37, %c0_38] : memref<1x16xf32, #tpu.memory_space<vmem>>, vector<1x16xf32>
    %64 = vector.broadcast %63 : vector<1x16xf32> to vector<32x16xf32>
    %65 = arith.addf %62, %64 : vector<32x16xf32>
    %cst_39 = arith.constant 0.000000e+00 : f32
    %66 = vector.broadcast %cst_39 : f32 to vector<32x16xf32>
    %67 = arith.maximumf %65, %66 : vector<32x16xf32>
    %68 = vector.shape_cast %67 : vector<32x16xf32> to vector<8x4x16xf32>
    %cst_40 = arith.constant dense<0xFF800000> : vector<8x16xf32>
    %69 = vector.multi_reduction <maximumf>, %68, %cst_40 [1] : vector<8x4x16xf32> to vector<8x16xf32>
    %cst_41 = arith.constant 0.000000e+00 : f32
    %70 = vector.broadcast %cst_41 : f32 to vector<8x96xf32>
    %71 = tpu.concatenate %33, %69, %70 in 1 : vector<8x16xf32>, vector<8x16xf32>, vector<8x96xf32> -> vector<8x128xf32>
    %c0_42 = arith.constant 0 : index
    %c0_43 = arith.constant 0 : index
    %72 = vector.load %arg7[%c0_42, %c0_43] : memref<8x128xf32, #tpu.memory_space<vmem>>, vector<8x128xf32>
    tpu.vector_store %arg7[%c0_42, %c0_43], %71 {strides = array<i32>} : memref<8x128xf32, #tpu.memory_space<vmem>>, vector<8x128xf32>,
    return
  }
  func.func @transform_0(%arg0: i32) -> (i32, i32) {
    %c0_i32 = arith.constant 0 : i32
    %c0_i32_0 = arith.constant 0 : i32
    %c0_i32_1 = arith.constant 0 : i32
    return %c0_i32, %c0_i32_0 : i32, i32
  }
  func.func @transform_1(%arg0: i32) -> (i32, i32) {
    %c0_i32 = arith.constant 0 : i32
    %c0_i32_0 = arith.constant 0 : i32
    %c0_i32_1 = arith.constant 0 : i32
    return %c0_i32, %c0_i32_0 : i32, i32
  }
  func.func @transform_2(%arg0: i32) -> (i32, i32, i32) {
    %c0_i32 = arith.constant 0 : i32
    %c0_i32_0 = arith.constant 0 : i32
    %c0_i32_1 = arith.constant 0 : i32
    %c0_i32_2 = arith.constant 0 : i32
    return %c0_i32, %c0_i32_0, %c0_i32_1 : i32, i32, i32
  }
  func.func @transform_3(%arg0: i32) -> (i32, i32, i32) {
    %c0_i32 = arith.constant 0 : i32
    %c0_i32_0 = arith.constant 0 : i32
    %c0_i32_1 = arith.constant 0 : i32
    %c0_i32_2 = arith.constant 0 : i32
    return %c0_i32, %c0_i32_0, %c0_i32_1 : i32, i32, i32
  }
  func.func @transform_4(%arg0: i32) -> (i32, i32) {
    %c0_i32 = arith.constant 0 : i32
    %c0_i32_0 = arith.constant 0 : i32
    %c0_i32_1 = arith.constant 0 : i32
    return %c0_i32, %c0_i32_0 : i32, i32
  }
  func.func @transform_5(%arg0: i32) -> (i32, i32) {
    %c0_i32 = arith.constant 0 : i32
    %c0_i32_0 = arith.constant 0 : i32
    %c0_i32_1 = arith.constant 0 : i32
    return %c0_i32, %c0_i32_0 : i32, i32
  }
  func.func @transform_6(%arg0: i32) -> (i32, i32) {
    %c0_i32 = arith.constant 0 : i32
    %c0_i32_0 = arith.constant 0 : i32
    %c0_i32_1 = arith.constant 0 : i32
    return %c0_i32, %c0_i32_0 : i32, i32
  }
}

</mosaic_0001>

<bundles_post_ra>
// kernel: tpu_custom_call.1
= control target key start
LH: loop header
LB: loop body
LE: loop exit
PB: predicated region body
PF: predicated region fallthrough
CT: control target
= control target key end

     0   :  { %vm101_vm0 = vcmask 1040384   ;;  %v1345_v2 = vmov 0   ;;  %s1954_s0 = inlined_call_operand.vmem [shape: s32[64,1], index: 0, kind: input, shape index: {}]   ;;  %s1955_s1 = inlined_call_operand.vmem [shape: f32[9,8], index: 1, kind: input, shape index: {}]   ;;  %s1956_s2 = inlined_call_operand.vmem [shape: f32[3,8,16], index: 2, kind: input, shape index: {}]   ;;  %s1957_s3 = inlined_call_operand.vmem [shape: f32[5,8,16], index: 3, kind: input, shape index: {}]   ;;  %s1958_s4 = inlined_call_operand.vmem [shape: f32[1,16], index: 4, kind: input, shape index: {}]   ;;  %s1959_s5 = inlined_call_operand.vmem [shape: f32[1,16], index: 5, kind: input, shape index: {}]   ;;  %s1960_s6 = inlined_call_operand.hbm [shape: f32[8,128], index: 6, kind: output, shape index: {}]  }
   0x1   :  { %v26_v0 = vld [vmem:[%s1954_s0 + $0x10] sm:$0xff]  ;;  %v24_v1 = vld [vmem:[%s1954_s0] sm:$0xff]  ;;  %1315 = vset.pattern.permute.xlu1 %v1345_v2  ;;  %1314 = vset.pattern.permute.xlu0 %v1345_v2  ;;  %v75_v4 = vld [vmem:[%s1955_s1 + $0x8] sm:$0x1] }
   0x2   :  { %41 = vperm.xlu1 %1315, %v26_v0   ;;  %35 = vperm.xlu0 %1314, %v24_v1   ;;  %v28_v3 = vld [vmem:[%s1954_s0 + $0x20] sm:$0xff]  ;;  %v27_v5 = vld [vmem:[%s1954_s0 + $0x18] sm:$0xff]  ;;  %v25_v6 = vld [vmem:[%s1954_s0 + $0x8] sm:$0xff] }
   0x3   :  { %1316 = vset.pattern.permute.xlu2 %v1345_v2  ;;  %1248 = vmatpush.msk.msra.mxu0 %vm101_vm0, %v75_v4 }
   0x4   :  { %47 = vperm.xlu2 %1316, %v28_v3  }
   0x5   :  { %11 = vsyncpa [#allocation3], 0  ;;  %v29_v7 = vld [vmem:[%s1954_s0 + $0x28] sm:$0xff]  ;;  %v31_v8 = vld [vmem:[%s1954_s0 + $0x38] sm:$0xff]  ;;  %v32_v11 = vlaneseq  ;;  %vm76_vm1 = vcmask 72704   ;;  %v1346_v14 = vmov 0.0  }
   0x6   :  { %v30_v9 = vld [vmem:[%s1954_s0 + $0x30] sm:$0xff]  ;;  %v74_v10 = vld [vmem:[%s1955_s1] sm:$0xff]  ;;  %v1257_v30 = vld [vmem:[%s1956_s2 + $0x8] sm:$0xff]  ;;  %vm179_vm10 = vcmask 1042434   ;;  %vm181_vm12 = vcmask 1044484   ;;  %vm183_vm14 = vcmask 1046534  }
   0x7   :  { %120 = vmatpush.msra.mxu0 %v74_v10  ;;  %v33_v12 = vand.u32 127, %v32_v11  ;;  %332 = vmatpush.msra.mxu1 %v1257_v30  ;;  %vm180_vm11 = vmor %vm101_vm0, %vm179_vm10  ;;  %vm858_vm15 = vcmask 1041408   ;;  %s1348_s8 = smov [#allocation2]   ;;  %s1239_s12 = sshll.u32 %s1960_s6, 4  ;;  %s1240_s12 = int_to_ptr.hbm [resolvable:$true] %s1239_s12 }
   0x8   :  { %1309 = vmatpush.msra.mxu2 %v1257_v30  ;;  %vm182_vm13 = vmor %vm180_vm11, %vm181_vm12  ;;  %vm1200_vm11 = vcmask 1043459   ;;  %s1237_s9 = sshll.u32 %s1348_s8, 4  ;;  %s1238_s9 = int_to_ptr.vmem [resolvable:$true] %s1237_s9 }
   0xa   :  { %44 = vperm.xlu1 %1315, %v27_v5   ;;  %38 = vperm.xlu0 %1314, %v25_v6  }
   0xc   :  { %50 = vperm.xlu2 %1316, %v29_v7  }
  0x12   :  { %56 = vperm.xlu1 %1315, %v31_v8   ;;  %53 = vperm.xlu0 %1314, %v30_v9  }
  0x5e   :  { %v48_v22 = vpop.permute.xlu2 %47 }
  0x5f   :  { %vm62_vm6 = vcmp.eq.s32.totalorder %v33_v12, %v48_v22 }
  0x60   :  { %v70_v23 = vsel %vm62_vm6, 1.0, %v1346_v14  ;;  %vm709_vm6 = vcmask 1042432  }
  0x66   :  { %v51_v24 = vpop.permute.xlu2 %50 }
  0x67   :  { %vm63_vm7 = vcmp.eq.s32.totalorder %v33_v12, %v51_v24 }
  0x68   :  { %v71_v25 = vsel %vm63_vm7, 1.0, %v1346_v14  ;;  %vm710_vm7 = vcmask 1046532  }
  0x74   :  { %v36_v13 = vpop.permute.xlu0 %35  ;;  %v42_v18 = vpop.permute.xlu1 %41 }
  0x75   :  { %vm58_vm2 = vcmp.eq.s32.totalorder %v33_v12, %v36_v13  ;;  %vm60_vm4 = vcmp.eq.s32.totalorder %v33_v12, %v42_v18 }
  0x76   :  { %v66_v15 = vsel %vm58_vm2, 1.0, %v1346_v14  ;;  %v68_v19 = vsel %vm60_vm4, 1.0, %v1346_v14  ;;  %vm859_vm2 = vcmask 1045508  }
  0x77   :  { %1249 = vmatmul.msk.f32.vlgmr.msra.gmra.mxu0 %vm76_vm1, %v66_v15  ;;  %vm1453_vm4 = vmor %vm858_vm15, %vm859_vm2  ;;  %vm1206_vm15 = vcmask 1047559   ;;  %vm1132_vm2 = vcmask 125952  }
  0x7c   :  { %v39_v16 = vpop.permute.xlu0 %38  ;;  %v45_v20 = vpop.permute.xlu1 %44 }
  0x7d   :  { %vm59_vm3 = vcmp.eq.s32.totalorder %v33_v12, %v39_v16  ;;  %vm61_vm5 = vcmp.eq.s32.totalorder %v33_v12, %v45_v20 }
  0x7e   :  { %v67_v17 = vsel %vm59_vm3, 1.0, %v1346_v14  ;;  %v69_v21 = vsel %vm61_vm5, 1.0, %v1346_v14  ;;  %vm1444_vm3 = vmor %vm101_vm0, %vm181_vm12  ;;  %vm304_vm0 = vcmask 64512   ;;  %vm651_vm5 = vcmask 128000  }
  0x7f   :  { %1250 = vmatmul.msk.f32.gmra.mxu0 %vm76_vm1, %v67_v17 }
  0x84   :  { %v54_v26 = vpop.permute.xlu0 %53  ;;  %v57_v28 = vpop.permute.xlu1 %56 }
  0x85   :  { %vm64_vm8 = vcmp.eq.s32.totalorder %v33_v12, %v54_v26  ;;  %vm65_vm9 = vcmp.eq.s32.totalorder %v33_v12, %v57_v28 }
  0x86   :  { %v72_v27 = vsel %vm64_vm8, 1.0, %v1346_v14  ;;  %v73_v29 = vsel %vm65_vm9, 1.0, %v1346_v14  ;;  %vm1197_vm8 = vcmask 1041409   ;;  %vm1794_vm9 = vmor %vm709_vm6, %vm710_vm7 }
  0x87   :  { %1251 = vmatmul.msk.f32.gmra.mxu0 %vm76_vm1, %v68_v19 }
  0x8f   :  { %1252 = vmatmul.msk.f32.gmra.mxu0 %vm76_vm1, %v69_v21 }
  0x97   :  { %1253 = vmatmul.msk.f32.gmra.mxu0 %vm76_vm1, %v70_v23 }
  0x9f   :  { %1254 = vmatmul.msk.f32.gmra.mxu0 %vm76_vm1, %v71_v25 }
  0xa7   :  { %1255 = vmatmul.msk.f32.gmra.mxu0 %vm76_vm1, %v72_v27 }
  0xaf   :  { %1256 = vmatmul.msk.f32.gmra.mxu0 %vm76_vm1, %v73_v29  ;;  %vm1432_vm1 = vmor %vm182_vm13, %vm183_vm14  ;;  %vm1203_vm13 = vcmask 1045509  }
  0xf4   :  { %v1429_v31 = vpop.f32.mrf.mxu0 }
  0xf5   :  { %v154_v33 = vrot.slane %v1429_v31, 2  ;;  %v1438_v34 = vrot.slane %v1429_v31, 4  ;;  %v171_v35 = vrot.slane %v1429_v31, 6  ;;  %v185_v36 = vrot.slane %v1429_v31, 7 }
  0xf7   :  { %v186_v38 = vrot.slane %v185_v36, 2  ;;  %v187_v39 = vrot.slane %v154_v33, 7  ;;  %v1451_v40 = vrot.slane %v1438_v34, 7  ;;  %v861_v42 = vrot.slane %v171_v35, 4 }
  0xf8   :  { %v862_v43 = vrot.slane %v1438_v34, 6  ;;  %v1458_v44 = vrot.slane %v185_v36, 4  ;;  %v193_v48 = vrot.slane %v171_v35, 7 }
  0xf9   :  { %v188_v45 = vsel %vm1432_vm1, %v186_v38, %v187_v39  ;;  %v189_v46 = vrot.slane %v187_v39, 2  ;;  %v192_v47 = vrot.slane %v1451_v40, 2 }
  0xfa   :  { %267 = vst [vmem:[#allocation1] ss:$4 sm:$0xff] %v188_v45  ;;  %v1465_v49 = vsel %vm1453_vm4, %v861_v42, %v862_v43 }
  0xfb   :  { %v191_v51 = vsel %vm1432_vm1, %v189_v46, %v1451_v40  ;;  %v194_v52 = vsel %vm1432_vm1, %v192_v47, %v193_v48 }
  0xfc   :  { %269 = vst [vmem:[#allocation1 + $0x1] ss:$4 sm:$0xff] %v191_v51  ;;  %v1476_v53 = vpop.f32.mrf.mxu0 }
  0xfd   :  { %271 = vst [vmem:[#allocation1 + $0x2] ss:$4 sm:$0xff] %v194_v52  ;;  %v156_v54 = vrot.slane %v1476_v53, 2  ;;  %v1480_v55 = vrot.slane %v1476_v53, 4  ;;  %v1961_v56 = vrot.slane %v1476_v53, 6  ;;  %v195_v57 = vrot.slane %v1476_v53, 7 }
  0xff   :  { %v196_v58 = vrot.slane %v195_v57, 2  ;;  %v197_v59 = vrot.slane %v156_v54, 7  ;;  %v1487_v60 = vrot.slane %v1480_v55, 7  ;;  %v1489_v61 = vrot.slane %v195_v57, 4 }
 0x100   :  { %v203_v1 = vrot.slane %v1961_v56, 7 }
 0x101   :  { %v198_v62 = vsel %vm1432_vm1, %v196_v58, %v197_v59  ;;  %v199_v63 = vrot.slane %v197_v59, 2  ;;  %v202_v0 = vrot.slane %v1487_v60, 2 }
 0x102   :  { %273 = vst [vmem:[#allocation1 + $0x3] ss:$4 sm:$0xff] %v198_v62 }
 0x103   :  { %v201_v3 = vsel %vm1432_vm1, %v199_v63, %v1487_v60  ;;  %v204_v4 = vsel %vm1432_vm1, %v202_v0, %v203_v1 }
 0x104   :  { %275 = vst [vmem:[#allocation1 + $0x20] ss:$4 sm:$0xff] %v201_v3  ;;  %v1505_v5 = vpop.f32.mrf.mxu0 }
 0x105   :  { %277 = vst [vmem:[#allocation1 + $0x21] ss:$4 sm:$0xff] %v204_v4  ;;  %v158_v6 = vrot.slane %v1505_v5, 2  ;;  %v1509_v7 = vrot.slane %v1505_v5, 4  ;;  %v173_v8 = vrot.slane %v1505_v5, 6  ;;  %v205_v9 = vrot.slane %v1505_v5, 7 }
 0x107   :  { %v206_v10 = vrot.slane %v205_v9, 2  ;;  %v207_v11 = vrot.slane %v158_v6, 7  ;;  %v1516_v12 = vrot.slane %v1509_v7, 7  ;;  %v867_v13 = vrot.slane %v173_v8, 4 }
 0x108   :  { %v868_v14 = vrot.slane %v1509_v7, 6  ;;  %v1519_v15 = vrot.slane %v205_v9, 4  ;;  %v213_v20 = vrot.slane %v173_v8, 7 }
 0x109   :  { %v282_v16 = vld.sshfl [vmem:[#allocation1] sm:$0xff pattern:$0x73625140]  ;;  %v208_v17 = vsel %vm1432_vm1, %v206_v10, %v207_v11  ;;  %v209_v18 = vrot.slane %v207_v11, 2  ;;  %v212_v19 = vrot.slane %v1516_v12, 2 }
 0x10a   :  { %279 = vst [vmem:[#allocation1 + $0x22] ss:$4 sm:$0xff] %v208_v17  ;;  %v1526_v21 = vsel %vm1453_vm4, %v867_v13, %v868_v14  ;;  %1258 = vmatmul.msk.f32.vlgmr.msra.gmra.mxu1 %vm304_vm0, %v282_v16 }
 0x10b   :  { %v211_v23 = vsel %vm1432_vm1, %v209_v18, %v1516_v12  ;;  %v214_v24 = vsel %vm1432_vm1, %v212_v19, %v213_v20 }
 0x10c   :  { %281 = vst [vmem:[#allocation1 + $0x23] ss:$4 sm:$0xff] %v211_v23  ;;  %v1538_v25 = vpop.f32.mrf.mxu0 }
 0x10d   :  { %284 = vst [vmem:[#allocation1] ss:$4 sm:$0xff] %v214_v24  ;;  %v160_v26 = vrot.slane %v1538_v25, 2  ;;  %v1542_v27 = vrot.slane %v1538_v25, 4  ;;  %v174_v28 = vrot.slane %v1538_v25, 6  ;;  %v215_v29 = vrot.slane %v1538_v25, 7 }
 0x10f   :  { %v216_v30 = vrot.slane %v215_v29, 2  ;;  %v217_v35 = vrot.slane %v160_v26, 7  ;;  %v1549_v36 = vrot.slane %v1542_v27, 7  ;;  %v870_v38 = vrot.slane %v174_v28, 4 }
 0x110   :  { %v871_v39 = vrot.slane %v1542_v27, 6  ;;  %v1552_v42 = vrot.slane %v215_v29, 4  ;;  %v223_v47 = vrot.slane %v174_v28, 7 }
 0x111   :  { %v218_v43 = vsel %vm1432_vm1, %v216_v30, %v217_v35  ;;  %v219_v45 = vrot.slane %v217_v35, 2  ;;  %v222_v46 = vrot.slane %v1549_v36, 2 }
 0x112   :  { %285 = vst [vmem:[#allocation1 + $0x1] ss:$4 sm:$0xff] %v218_v43  ;;  %v1559_v48 = vsel %vm1453_vm4, %v870_v38, %v871_v39 }
 0x113   :  { %v283_v52 = vld.sshfl [vmem:[#allocation1 + $0x20] sm:$0xff pattern:$0x73625140]  ;;  %v221_v57 = vsel %vm1432_vm1, %v219_v45, %v1549_v36  ;;  %v224_v58 = vsel %vm1432_vm1, %v222_v46, %v223_v47 }
 0x114   :  { %286 = vst [vmem:[#allocation1 + $0x2] ss:$4 sm:$0xff] %v221_v57  ;;  %v1570_v59 = vpop.f32.mrf.mxu0  ;;  %1259 = vmatmul.msk.f32.gmra.mxu1 %vm304_vm0, %v283_v52 }
 0x115   :  { %287 = vst [vmem:[#allocation1 + $0x3] ss:$4 sm:$0xff] %v224_v58  ;;  %v162_v62 = vrot.slane %v1570_v59, 2  ;;  %v1575_v63 = vrot.slane %v1570_v59, 4  ;;  %v175_v0 = vrot.slane %v1570_v59, 6  ;;  %v225_v1 = vrot.slane %v1570_v59, 7 }
 0x117   :  { %v226_v3 = vrot.slane %v225_v1, 2  ;;  %v227_v4 = vrot.slane %v162_v62, 7  ;;  %v1582_v8 = vrot.slane %v1575_v63, 7  ;;  %v873_v9 = vrot.slane %v175_v0, 4 }
 0x118   :  { %v874_v10 = vrot.slane %v1575_v63, 6  ;;  %v1585_v11 = vrot.slane %v225_v1, 4  ;;  %v233_v17 = vrot.slane %v175_v0, 7 }
 0x119   :  { %1972 = vst [vmem:[#allocation5_spill] sm:$0xff] %v1582_v8  ;;  %v228_v13 = vsel %vm1432_vm1, %v226_v3, %v227_v4  ;;  %v229_v14 = vrot.slane %v227_v4, 2  ;;  %v232_v16 = vrot.slane %v1582_v8, 2 }
 0x11a   :  { %1973 = vst [vmem:[#allocation6_spill] sm:$0xff] %v1585_v11  ;;  %v1592_v18 = vsel %vm1453_vm4, %v873_v9, %v874_v10 }
 0x11b   :  { %288 = vst [vmem:[#allocation1 + $0x20] ss:$4 sm:$0xff] %v228_v13  ;;  %v231_v20 = vsel %vm1432_vm1, %v229_v14, %v1582_v8  ;;  %v234_v23 = vsel %vm1432_vm1, %v232_v16, %v233_v17  ;;  %v170_v14 = vld [vmem:[%s1956_s2] sm:$0xff] }
 0x11c   :  { %v292_v24 = vld.sshfl [vmem:[#allocation1] sm:$0xff pattern:$0x73625140]  ;;  %289 = vst [vmem:[#allocation1 + $0x21] ss:$4 sm:$0xff] %v231_v20  ;;  %v1603_v28 = vpop.f32.mrf.mxu0  ;;  %416 = vmatpush.msrb.mxu2 %v170_v14 }
 0x11d   :  { %290 = vst [vmem:[#allocation1 + $0x22] ss:$4 sm:$0xff] %v234_v23  ;;  %v164_v29 = vrot.slane %v1603_v28, 2  ;;  %v1607_v30 = vrot.slane %v1603_v28, 4  ;;  %v176_v35 = vrot.slane %v1603_v28, 6  ;;  %v235_v38 = vrot.slane %v1603_v28, 7  ;;  %1260 = vmatmul.msk.f32.gmra.mxu1 %vm304_vm0, %v292_v24 }
 0x11f   :  { %v236_v39 = vrot.slane %v235_v38, 2  ;;  %v237_v43 = vrot.slane %v164_v29, 7  ;;  %v1615_v45 = vrot.slane %v1607_v30, 7  ;;  %v876_v46 = vrot.slane %v176_v35, 4 }
 0x120   :  { %v877_v47 = vrot.slane %v1607_v30, 6  ;;  %v1618_v52 = vrot.slane %v235_v38, 4  ;;  %v243_v1 = vrot.slane %v176_v35, 7 }
 0x121   :  { %1974 = vst [vmem:[#allocation7_spill] sm:$0xff] %v1615_v45  ;;  %v238_v57 = vsel %vm1432_vm1, %v236_v39, %v237_v43  ;;  %v239_v58 = vrot.slane %v237_v43, 2  ;;  %v242_v0 = vrot.slane %v1615_v45, 2 }
 0x122   :  { %1975 = vst [vmem:[#allocation8_spill] sm:$0xff] %v1618_v52  ;;  %v1625_v3 = vsel %vm1453_vm4, %v876_v46, %v877_v47 }
 0x123   :  { %291 = vst [vmem:[#allocation1 + $0x23] ss:$4 sm:$0xff] %v238_v57  ;;  %v241_v9 = vsel %vm1432_vm1, %v239_v58, %v1615_v45  ;;  %v244_v10 = vsel %vm1432_vm1, %v242_v0, %v243_v1 }
 0x124   :  { %294 = vst [vmem:[#allocation1] ss:$4 sm:$0xff] %v241_v9  ;;  %v1636_v13 = vpop.f32.mrf.mxu0 }
 0x125   :  { %295 = vst [vmem:[#allocation1 + $0x1] ss:$4 sm:$0xff] %v244_v10  ;;  %v166_v16 = vrot.slane %v1636_v13, 2  ;;  %v1643_v17 = vrot.slane %v1636_v13, 4  ;;  %v177_v20 = vrot.slane %v1636_v13, 6  ;;  %v245_v23 = vrot.slane %v1636_v13, 7 }
 0x127   :  { %v246_v24 = vrot.slane %v245_v23, 2  ;;  %v247_v35 = vrot.slane %v166_v16, 7  ;;  %v1650_v38 = vrot.slane %v1643_v17, 7  ;;  %v879_v39 = vrot.slane %v177_v20, 4 }
 0x128   :  { %v880_v43 = vrot.slane %v1643_v17, 6  ;;  %v1653_v46 = vrot.slane %v245_v23, 4  ;;  %v253_v1 = vrot.slane %v177_v20, 7 }
 0x129   :  { %v248_v57 = vsel %vm1432_vm1, %v246_v24, %v247_v35  ;;  %v249_v58 = vrot.slane %v247_v35, 2  ;;  %v252_v0 = vrot.slane %v1650_v38, 2 }
 0x12a   :  { %v293_v47 = vld.sshfl [vmem:[#allocation1 + $0x20] sm:$0xff pattern:$0x73625140]  ;;  %296 = vst [vmem:[#allocation1 + $0x2] ss:$4 sm:$0xff] %v248_v57  ;;  %v1660_v9 = vsel %vm1453_vm4, %v879_v39, %v880_v43 }
 0x12b   :  { %1261 = vmatmul.msk.f32.gmra.mxu1 %vm304_vm0, %v293_v47  ;;  %v251_v14 = vsel %vm1432_vm1, %v249_v58, %v1650_v38  ;;  %v254_v23 = vsel %vm1432_vm1, %v252_v0, %v253_v1 }
 0x12c   :  { %297 = vst [vmem:[#allocation1 + $0x3] ss:$4 sm:$0xff] %v251_v14  ;;  %v1672_v20 = vpop.f32.mrf.mxu0 }
 0x12d   :  { %298 = vst [vmem:[#allocation1 + $0x20] ss:$4 sm:$0xff] %v254_v23  ;;  %v168_v24 = vrot.slane %v1672_v20, 2  ;;  %v1676_v35 = vrot.slane %v1672_v20, 4  ;;  %v178_v39 = vrot.slane %v1672_v20, 6  ;;  %v255_v43 = vrot.slane %v1672_v20, 7 }
 0x12f   :  { %v256_v47 = vrot.slane %v255_v43, 2  ;;  %v257_v57 = vrot.slane %v168_v24, 7  ;;  %v1681_v58 = vrot.slane %v1676_v35, 7  ;;  %v882_v4 = vrot.slane %v178_v39, 4 }
 0x130   :  { %v883_v0 = vrot.slane %v1676_v35, 6  ;;  %v1684_v1 = vrot.slane %v255_v43, 4  ;;  %v263_v43 = vrot.slane %v178_v39, 7 }
 0x131   :  { %v258_v14 = vsel %vm1432_vm1, %v256_v47, %v257_v57  ;;  %v259_v23 = vrot.slane %v257_v57, 2  ;;  %v262_v19 = vrot.slane %v1681_v58, 2 }
 0x132   :  { %299 = vst [vmem:[#allocation1 + $0x21] ss:$4 sm:$0xff] %v258_v14  ;;  %v1691_v2 = vsel %vm1453_vm4, %v882_v4, %v883_v0 }
 0x133   :  { %v302_v10 = vld.sshfl [vmem:[#allocation1] sm:$0xff pattern:$0x73625140]  ;;  %v261_v47 = vsel %vm1432_vm1, %v259_v23, %v1681_v58  ;;  %v264_v4 = vsel %vm1432_vm1, %v262_v19, %v263_v43  ;;  %v1270_v43 = vld [vmem:[%s1956_s2 + $0x10] sm:$0xff]  ;;  %vm1229_vm1 = vcmask 261120  }
 0x134   :  { %356 = vst [vmem:[#allocation1 + $0x2] ss:$4 sm:$0xff] %v1438_v34  ;;  %1262 = vmatmul.msk.f32.vlgmr.msra.gmra.mxu2 %vm304_vm0, %v302_v10  ;;  %540 = vmatpush.msra.mxu3 %v1270_v43 }
 0x135   :  { %358 = vst [vmem:[#allocation1 + $0x3] ss:$4 sm:$0xff] %v1476_v53 }
 0x136   :  { %352 = vst [vmem:[#allocation1] ss:$4 sm:$0xff] %v1429_v31 }
 0x137   :  { %354 = vst [vmem:[#allocation1 + $0x1] ss:$4 sm:$0xff] %v154_v33 }
 0x138   :  { %300 = vst [vmem:[#allocation1 + $0x22] ss:$4 sm:$0xff] %v261_v47 }
 0x139   :  { %301 = vst [vmem:[#allocation1 + $0x23] ss:$4 sm:$0xff] %v264_v4 }
 0x13e   :  { %v367_v57 = vld.sshfl [vmem:[#allocation1] sm:$0xff pattern:$0x73625140] }
 0x13f   :  { %369 = vst [vmem:[#allocation1] ss:$4 sm:$0xff] %v1509_v7 }
 0x140   :  { %v303_v10 = vld.sshfl [vmem:[#allocation1 + $0x20] sm:$0xff pattern:$0x73625140]  ;;  %370 = vst [vmem:[#allocation1 + $0x1] ss:$4 sm:$0xff] %v1538_v25 }
 0x141   :  { %362 = vst [vmem:[#allocation1 + $0x21] ss:$4 sm:$0xff] %v1480_v55  ;;  %1263 = vmatmul.msk.f32.gmra.mxu2 %vm304_vm0, %v303_v10 }
 0x142   :  { %364 = vst [vmem:[#allocation1 + $0x22] ss:$4 sm:$0xff] %v1505_v5 }
 0x143   :  { %366 = vst [vmem:[#allocation1 + $0x23] ss:$4 sm:$0xff] %v158_v6 }
 0x144   :  { %360 = vst [vmem:[#allocation1 + $0x20] ss:$4 sm:$0xff] %v156_v54 }
 0x145   :  { %371 = vst [vmem:[#allocation1 + $0x2] ss:$4 sm:$0xff] %v160_v26 }
 0x146   :  { %372 = vst [vmem:[#allocation1 + $0x3] ss:$4 sm:$0xff] %v1542_v27 }
 0x149   :  { %1264 = vmatmul.msk.f32.vlgmr.msrb.gmra.mxu2 %vm304_vm0, %v367_v57 }
 0x14b   :  { %v368_v32 = vld.sshfl [vmem:[#allocation1 + $0x20] sm:$0xff pattern:$0x73625140] }
 0x14c   :  { %373 = vst [vmem:[#allocation1 + $0x20] ss:$4 sm:$0xff] %v1570_v59 }
 0x14d   :  { %374 = vst [vmem:[#allocation1 + $0x21] ss:$4 sm:$0xff] %v162_v62  ;;  %v377_v33 = vld.sshfl [vmem:[#allocation1] sm:$0xff pattern:$0x73625140] }
 0x14e   :  { %375 = vst [vmem:[#allocation1 + $0x22] ss:$4 sm:$0xff] %v1575_v63 }
 0x14f   :  { %376 = vst [vmem:[#allocation1 + $0x23] ss:$4 sm:$0xff] %v1603_v28 }
 0x150   :  { %379 = vst [vmem:[#allocation1] ss:$4 sm:$0xff] %v164_v29 }
 0x151   :  { %1265 = vmatmul.msk.f32.gmra.mxu2 %vm304_vm0, %v368_v32  ;;  %380 = vst [vmem:[#allocation1 + $0x1] ss:$4 sm:$0xff] %v1607_v30 }
 0x152   :  { %381 = vst [vmem:[#allocation1 + $0x2] ss:$4 sm:$0xff] %v1636_v13 }
 0x153   :  { %382 = vst [vmem:[#allocation1 + $0x3] ss:$4 sm:$0xff] %v166_v16 }
 0x156   :  { %v378_v54 = vld.sshfl [vmem:[#allocation1 + $0x20] sm:$0xff pattern:$0x73625140] }
 0x157   :  { %383 = vst [vmem:[#allocation1 + $0x20] ss:$4 sm:$0xff] %v1643_v17 }
 0x158   :  { %384 = vst [vmem:[#allocation1 + $0x21] ss:$4 sm:$0xff] %v1672_v20 }
 0x159   :  { %1266 = vmatmul.msk.f32.gmra.mxu2 %vm304_vm0, %v377_v33  ;;  %385 = vst [vmem:[#allocation1 + $0x22] ss:$4 sm:$0xff] %v168_v24 }
 0x15a   :  { %386 = vst [vmem:[#allocation1 + $0x23] ss:$4 sm:$0xff] %v1676_v35  ;;  %v387_v6 = vld.sshfl [vmem:[#allocation1] sm:$0xff pattern:$0x73625140] }
 0x15b   :  { %436 = vst.sshfl [vmem:[#allocation1] sm:$0xff pattern:$0x73625140] %v1429_v31 }
 0x161   :  { %1267 = vmatmul.msk.f32.gmra.mxu2 %vm304_vm0, %v378_v54  ;;  %v388_v26 = vld.sshfl [vmem:[#allocation1 + $0x20] sm:$0xff pattern:$0x73625140] }
 0x162   :  { %v438_v62 = vld [vmem:[#allocation1 + $0x1] ss:$4 sm:$0xff]  ;;  %v440_v19 = vld [vmem:[#allocation1 + $0x2] ss:$4 sm:$0xff]  ;;  %v442_v29 = vld [vmem:[#allocation1 + $0x3] ss:$4 sm:$0xff] }
 0x163   :  { %443 = vst.sshfl [vmem:[#allocation1 + $0x20] sm:$0xff pattern:$0x73625140] %v1476_v53 }
 0x164   :  { %450 = vst.sshfl [vmem:[#allocation1] sm:$0xff pattern:$0x73625140] %v1505_v5 }
 0x169   :  { %1268 = vmatmul.msk.f32.gmra.mxu2 %vm304_vm0, %v387_v6 }
 0x16a   :  { %v445_v16 = vld [vmem:[#allocation1 + $0x21] ss:$4 sm:$0xff]  ;;  %v447_v39 = vld [vmem:[#allocation1 + $0x22] ss:$4 sm:$0xff]  ;;  %v449_v24 = vld [vmem:[#allocation1 + $0x23] ss:$4 sm:$0xff] }
 0x16b   :  { %v451_v0 = vld [vmem:[#allocation1 + $0x1] ss:$4 sm:$0xff]  ;;  %v452_v14 = vld [vmem:[#allocation1 + $0x2] ss:$4 sm:$0xff]  ;;  %v453_v23 = vld [vmem:[#allocation1 + $0x3] ss:$4 sm:$0xff] }
 0x16c   :  { %458 = vst.sshfl [vmem:[#allocation1] sm:$0xff pattern:$0x73625140] %v1570_v59 }
 0x16d   :  { %454 = vst.sshfl [vmem:[#allocation1 + $0x20] sm:$0xff pattern:$0x73625140] %v1538_v25 }
 0x171   :  { %1269 = vmatmul.msk.f32.gmra.mxu2 %vm304_vm0, %v388_v26 }
 0x173   :  { %v459_v47 = vld [vmem:[#allocation1 + $0x1] ss:$4 sm:$0xff]  ;;  %v460_v4 = vld [vmem:[#allocation1 + $0x2] ss:$4 sm:$0xff]  ;;  %v461_v57 = vld [vmem:[#allocation1 + $0x3] ss:$4 sm:$0xff] }
 0x174   :  { %466 = vst.sshfl [vmem:[#allocation1] sm:$0xff pattern:$0x73625140] %v1636_v13  ;;  %v455_v10 = vld [vmem:[#allocation1 + $0x21] ss:$4 sm:$0xff] }
 0x175   :  { %476 = vst [vmem:[#allocation1] ss:$4 sm:$0xff] %v438_v62  ;;  %v456_v32 = vld [vmem:[#allocation1 + $0x22] ss:$4 sm:$0xff]  ;;  %v457_v33 = vld [vmem:[#allocation1 + $0x23] ss:$4 sm:$0xff] }
 0x176   :  { %462 = vst.sshfl [vmem:[#allocation1 + $0x20] sm:$0xff pattern:$0x73625140] %v1603_v28 }
 0x17b   :  { %v467_v54 = vld [vmem:[#allocation1 + $0x1] ss:$4 sm:$0xff]  ;;  %v468_v6 = vld [vmem:[#allocation1 + $0x2] ss:$4 sm:$0xff]  ;;  %v469_v50 = vld [vmem:[#allocation1 + $0x3] ss:$4 sm:$0xff] }
 0x17c   :  { %478 = vst [vmem:[#allocation1 + $0x1] ss:$4 sm:$0xff] %v440_v19 }
 0x17d   :  { %480 = vst [vmem:[#allocation1 + $0x2] ss:$4 sm:$0xff] %v442_v29  ;;  %v463_v51 = vld [vmem:[#allocation1 + $0x21] ss:$4 sm:$0xff]  ;;  %v464_v43 = vld [vmem:[#allocation1 + $0x22] ss:$4 sm:$0xff] }
 0x17e   :  { %482 = vst [vmem:[#allocation1 + $0x3] ss:$4 sm:$0xff] %v445_v16  ;;  %v465_v26 = vld [vmem:[#allocation1 + $0x23] ss:$4 sm:$0xff] }
 0x17f   :  { %470 = vst.sshfl [vmem:[#allocation1 + $0x20] sm:$0xff pattern:$0x73625140] %v1672_v20 }
 0x180   :  { %484 = vst [vmem:[#allocation1 + $0x20] ss:$4 sm:$0xff] %v447_v39 }
 0x185   :  { %v491_v22 = vld.sshfl [vmem:[#allocation1] sm:$0xff pattern:$0x73625140] }
 0x186   :  { %493 = vst [vmem:[#allocation1] ss:$4 sm:$0xff] %v453_v23  ;;  %v471_v56 = vld [vmem:[#allocation1 + $0x21] ss:$4 sm:$0xff]  ;;  %v472_v62 = vld [vmem:[#allocation1 + $0x22] ss:$4 sm:$0xff]  ;;  %1271 = vmatmul.msk.f32.vlgmr.msra.gmra.mxu3 %vm304_vm0, %v491_v22 }
 0x187   :  { %v473_v45 = vld [vmem:[#allocation1 + $0x23] ss:$4 sm:$0xff]  ;;  %486 = vst [vmem:[#allocation1 + $0x21] ss:$4 sm:$0xff] %v449_v24 }
 0x188   :  { %488 = vst [vmem:[#allocation1 + $0x22] ss:$4 sm:$0xff] %v451_v0 }
 0x189   :  { %490 = vst [vmem:[#allocation1 + $0x23] ss:$4 sm:$0xff] %v452_v14  ;;  %v334_v14 = vpop.f32.mrf.mxu1 }
 0x18a   :  { %496 = vst [vmem:[#allocation1 + $0x3] ss:$4 sm:$0xff] %v457_v33 }
 0x18b   :  { %494 = vst [vmem:[#allocation1 + $0x1] ss:$4 sm:$0xff] %v455_v10 }
 0x18c   :  { %495 = vst [vmem:[#allocation1 + $0x2] ss:$4 sm:$0xff] %v456_v32 }
 0x190   :  { %v492_v19 = vld.sshfl [vmem:[#allocation1 + $0x20] sm:$0xff pattern:$0x73625140] }
 0x191   :  { %497 = vst [vmem:[#allocation1 + $0x20] ss:$4 sm:$0xff] %v459_v47  ;;  %1272 = vmatmul.msk.f32.gmra.mxu3 %vm304_vm0, %v492_v19  ;;  %v337_v10 = vpop.f32.mrf.mxu1 }
 0x192   :  { %498 = vst [vmem:[#allocation1 + $0x21] ss:$4 sm:$0xff] %v460_v4 }
 0x193   :  { %499 = vst [vmem:[#allocation1 + $0x22] ss:$4 sm:$0xff] %v461_v57  ;;  %v501_v29 = vld.sshfl [vmem:[#allocation1] sm:$0xff pattern:$0x73625140] }
 0x194   :  { %500 = vst [vmem:[#allocation1 + $0x23] ss:$4 sm:$0xff] %v463_v51 }
 0x195   :  { %503 = vst [vmem:[#allocation1] ss:$4 sm:$0xff] %v464_v43 }
 0x196   :  { %504 = vst [vmem:[#allocation1 + $0x1] ss:$4 sm:$0xff] %v465_v26 }
 0x197   :  { %505 = vst [vmem:[#allocation1 + $0x2] ss:$4 sm:$0xff] %v467_v54 }
 0x198   :  { %506 = vst [vmem:[#allocation1 + $0x3] ss:$4 sm:$0xff] %v468_v6 }
 0x199   :  { %1273 = vmatmul.msk.f32.gmra.mxu3 %vm304_vm0, %v501_v29 }
 0x19b   :  { %v502_v22 = vld.sshfl [vmem:[#allocation1 + $0x20] sm:$0xff pattern:$0x73625140] }
 0x19c   :  { %507 = vst [vmem:[#allocation1 + $0x20] ss:$4 sm:$0xff] %v469_v50  ;;  %v1764_v50 = vld [vmem:[%s1958_s4] ss:$0 sm:$0xff] }
 0x19d   :  { %508 = vst [vmem:[#allocation1 + $0x21] ss:$4 sm:$0xff] %v471_v56 }
 0x19e   :  { %509 = vst [vmem:[#allocation1 + $0x22] ss:$4 sm:$0xff] %v472_v62 }
 0x19f   :  { %510 = vst [vmem:[#allocation1 + $0x23] ss:$4 sm:$0xff] %v473_v45  ;;  %v511_v16 = vld.sshfl [vmem:[#allocation1] sm:$0xff pattern:$0x73625140] }
 0x1a1   :  { %1274 = vmatmul.msk.f32.gmra.mxu3 %vm304_vm0, %v502_v22  ;;  %v340_v22 = vpop.f32.mrf.mxu1 }
 0x1a6   :  { %v512_v39 = vld.sshfl [vmem:[#allocation1 + $0x20] sm:$0xff pattern:$0x73625140] }
 0x1a9   :  { %1275 = vmatmul.msk.f32.gmra.mxu3 %vm304_vm0, %v511_v16 }
 0x1b1   :  { %1276 = vmatmul.msk.f32.gmra.mxu3 %vm304_vm0, %v512_v39 }
 0x1b7   :  { %v1757_v51 = vpop.f32.mrf.mxu2 }
 0x1c4   :  { %v1759_v24 = vpop.f32.mrf.mxu2 }
 0x1cc   :  { %v418_v0 = vpop.f32.mrf.mxu2 }
 0x1cd   :  { %v419_v23 = vadd.f32 %v418_v0, %v334_v14 }
 0x1d4   :  { %v421_v47 = vpop.f32.mrf.mxu2 }
 0x1d5   :  { %v422_v43 = vadd.f32 %v421_v47, %v337_v10 }
 0x1dc   :  { %v424_v6 = vpop.f32.mrf.mxu2 }
 0x1dd   :  { %v425_v39 = vadd.f32 %v424_v6, %v340_v22 }
 0x209   :  { %v542_v56 = vpop.f32.mrf.mxu3 }
 0x20a   :  { %v560_v45 = vadd.f32 %v542_v56, %v419_v23  ;;  %v427_v56 = vpop.f32.mrf.mxu2 }
 0x20c   :  { %v570_v4 = vadd.f32 %v1764_v50, %v560_v45 }
 0x20e   :  { %v576_v57 = vmax.f32 %v570_v4, 0.0 }
 0x210   :  { %v588_v32 = vrot.slane %v576_v57, 2  ;;  %v589_v33 = vrot.slane %v576_v57, 4  ;;  %v590_v54 = vrot.slane %v576_v57, 6  ;;  %606 = vst [vmem:[#allocation1] ss:$4 sm:$0xff] %v576_v57 }
 0x212   :  { %608 = vst [vmem:[#allocation1 + $0x1] ss:$4 sm:$0xff] %v588_v32  ;;  %v343_v32 = vpop.f32.mrf.mxu1 }
 0x213   :  { %610 = vst [vmem:[#allocation1 + $0x2] ss:$4 sm:$0xff] %v589_v33 }
 0x214   :  { %613 = vst [vmem:[#allocation1 + $0x20] ss:$4 sm:$0xff] %v590_v54  ;;  %v545_v26 = vpop.f32.mrf.mxu3  ;;  %v428_v54 = vadd.f32 %v427_v56, %v343_v32  ;;  %v1285_v56 = vld [vmem:[%s1957_s3 + $0x8] sm:$0xff] }
 0x215   :  { %v561_v62 = vadd.f32 %v545_v26, %v422_v43  ;;  %788 = vmatpush.msrb.mxu1 %v1285_v56 }
 0x217   :  { %v571_v19 = vadd.f32 %v1764_v50, %v561_v62 }
 0x219   :  { %v577_v29 = vmax.f32 %v571_v19, 0.0 }
 0x21a   :  { %v611_v16 = vld.sshfl [vmem:[#allocation1] sm:$0xff pattern:$0x73625140] }
 0x21b   :  { %v591_v0 = vrot.slane %v577_v29, 2  ;;  %v592_v14 = vrot.slane %v577_v29, 4  ;;  %v593_v23 = vrot.slane %v577_v29, 6  ;;  %615 = vst [vmem:[#allocation1 + $0x21] ss:$4 sm:$0xff] %v577_v29  ;;  %v652_v57 = vsel %vm651_vm5, %v611_v16, -inf }
 0x21c   :  { %v548_v45 = vpop.f32.mrf.mxu3  ;;  %v653_v33 = vrot.slane %v652_v57, 4 }
 0x21d   :  { %617 = vst [vmem:[#allocation1 + $0x22] ss:$4 sm:$0xff] %v591_v0  ;;  %v562_v4 = vadd.f32 %v548_v45, %v425_v39  ;;  %v430_v39 = vpop.f32.mrf.mxu2  ;;  %v708_v45 = vld [vmem:[%s1957_s3] sm:$0xff] }
 0x21e   :  { %619 = vst [vmem:[#allocation1] ss:$4 sm:$0xff] %v592_v14  ;;  %v654_v0 = vmax.f32 %v652_v57, %v653_v33  ;;  %v1294_v57 = vld [vmem:[%s1957_s3 + $0x10] sm:$0xff]  ;;  %844 = vmatpush.msra.mxu2 %v708_v45 }
 0x21f   :  { %620 = vst [vmem:[#allocation1 + $0x1] ss:$4 sm:$0xff] %v593_v23  ;;  %v572_v47 = vadd.f32 %v1764_v50, %v562_v4  ;;  %v1299_v23 = vld [vmem:[%s1957_s3 + $0x18] sm:$0xff]  ;;  %929 = vmatpush.msrb.mxu3 %v1294_v57 }
 0x220   :  { %1008 = vmatpush.msrb.mxu0 %v1299_v23  ;;  %v655_v33 = vrot.slane %v654_v0, 2 }
 0x221   :  { %v578_v10 = vmax.f32 %v572_v47, 0.0 }
 0x222   :  { %v656_v23 = vmax.f32 %v654_v0, %v655_v33 }
 0x223   :  { %v594_v6 = vrot.slane %v578_v10, 2  ;;  %v595_v43 = vrot.slane %v578_v10, 4  ;;  %v596_v26 = vrot.slane %v578_v10, 6  ;;  %621 = vst [vmem:[#allocation1 + $0x2] ss:$4 sm:$0xff] %v578_v10  ;;  %v431_v10 = vadd.f32 %v430_v39, %v1757_v51 }
 0x224   :  { %v618_v62 = vld.sshfl [vmem:[#allocation1 + $0x20] sm:$0xff pattern:$0x73625140]  ;;  %v551_v19 = vpop.f32.mrf.mxu3 }
 0x225   :  { %623 = vst [vmem:[#allocation1 + $0x20] ss:$4 sm:$0xff] %v594_v6  ;;  %v563_v29 = vadd.f32 %v551_v19, %v428_v54  ;;  %v659_v22 = vsel %vm651_vm5, %v618_v62, -inf  ;;  %v433_v45 = vpop.f32.mrf.mxu2 }
 0x226   :  { %624 = vst [vmem:[#allocation1 + $0x21] ss:$4 sm:$0xff] %v595_v43  ;;  %v660_v14 = vrot.slane %v659_v22, 4  ;;  %v434_v33 = vadd.f32 %v433_v45, %v1759_v24 }
 0x227   :  { %625 = vst [vmem:[#allocation1 + $0x22] ss:$4 sm:$0xff] %v596_v26  ;;  %v573_v16 = vadd.f32 %v1764_v50, %v563_v29 }
 0x228   :  { %v661_v4 = vmax.f32 %v659_v22, %v660_v14 }
 0x229   :  { %v579_v47 = vmax.f32 %v573_v16, 0.0 }
 0x22a   :  { %v622_v32 = vld.sshfl [vmem:[#allocation1] sm:$0xff pattern:$0x73625140]  ;;  %v662_v54 = vrot.slane %v661_v4, 2 }
 0x22b   :  { %v597_v6 = vrot.slane %v579_v47, 2  ;;  %v598_v43 = vrot.slane %v579_v47, 4  ;;  %v599_v26 = vrot.slane %v579_v47, 6  ;;  %627 = vst [vmem:[#allocation1] ss:$4 sm:$0xff] %v579_v47  ;;  %v666_v62 = vsel %vm651_vm5, %v622_v32, -inf }
 0x22c   :  { %v554_v19 = vpop.f32.mrf.mxu3  ;;  %v663_v29 = vmax.f32 %v661_v4, %v662_v54  ;;  %v667_v22 = vrot.slane %v666_v62, 4  ;;  %v722_v4 = vrot.slane %v1509_v7, 5  ;;  %v657_v54 = vrot.slane %v656_v23, 1 }
 0x22d   :  { %628 = vst [vmem:[#allocation1 + $0x1] ss:$4 sm:$0xff] %v597_v6  ;;  %v564_v14 = vadd.f32 %v554_v19, %v431_v10  ;;  %v726_v10 = vrot.slane %v1542_v27, 5  ;;  %v1280_v19 = vrot.slane %v1538_v25, 9 }
 0x22e   :  { %v626_v16 = vld.sshfl [vmem:[#allocation1 + $0x20] sm:$0xff pattern:$0x73625140]  ;;  %629 = vst [vmem:[#allocation1 + $0x2] ss:$4 sm:$0xff] %v598_v43  ;;  %v668_v51 = vmax.f32 %v666_v62, %v667_v22  ;;  %v664_v57 = vrot.slane %v663_v29, 1 }
 0x22f   :  { %631 = vst [vmem:[#allocation1 + $0x20] ss:$4 sm:$0xff] %v599_v26  ;;  %v574_v39 = vadd.f32 %v1764_v50, %v564_v14  ;;  %v673_v56 = vsel %vm651_vm5, %v626_v16, -inf }
 0x230   :  { %v669_v52 = vrot.slane %v668_v51, 2  ;;  %v674_v47 = vrot.slane %v673_v56, 4  ;;  %v665_v14 = vmax.f32 %v663_v29, %v664_v57  ;;  %v727_v29 = vsel %vm1794_vm9, %v1280_v19, %v726_v10 }
 0x231   :  { %v580_v32 = vmax.f32 %v574_v39, 0.0  ;;  %v1279_v57 = vrot.slane %v1505_v5, 9  ;;  %v738_v10 = vrot.slane %v1643_v17, 5  ;;  %v714_v17 = vrot.slane %v1438_v34, 5 }
 0x232   :  { %v670_v6 = vmax.f32 %v668_v51, %v669_v52  ;;  %v675_v0 = vmax.f32 %v673_v56, %v674_v47  ;;  %v658_v52 = vmax.f32 %v656_v23, %v657_v54 }
 0x233   :  { %v600_v43 = vrot.slane %v580_v32, 2  ;;  %v601_v26 = vrot.slane %v580_v32, 4  ;;  %v602_v62 = vrot.slane %v580_v32, 6  ;;  %632 = vst [vmem:[#allocation1 + $0x21] ss:$4 sm:$0xff] %v580_v32 }
 0x234   :  { %v557_v22 = vpop.f32.mrf.mxu3  ;;  %v671_v16 = vrot.slane %v670_v6, 1  ;;  %v676_v8 = vrot.slane %v675_v0, 2  ;;  %v1198_v32 = vsel %vm1197_vm8, %v665_v14, %v658_v52  ;;  %v718_v52 = vrot.slane %v1480_v55, 5 }
 0x235   :  { %v630_v11 = vld.sshfl [vmem:[#allocation1] sm:$0xff pattern:$0x73625140]  ;;  %633 = vst [vmem:[#allocation1 + $0x22] ss:$4 sm:$0xff] %v600_v43  ;;  %v565_v7 = vadd.f32 %v557_v22, %v434_v33  ;;  %v1283_v22 = vrot.slane %v1636_v13, 9 }
 0x236   :  { %635 = vst [vmem:[#allocation1] ss:$4 sm:$0xff] %v601_v26  ;;  %v672_v24 = vmax.f32 %v670_v6, %v671_v16  ;;  %v677_v51 = vmax.f32 %v675_v0, %v676_v8  ;;  %v680_v39 = vsel %vm651_vm5, %v630_v11, -inf  ;;  %v723_v11 = vsel %vm1794_vm9, %v1279_v57, %v722_v4 }
 0x237   :  { %636 = vst [vmem:[#allocation1 + $0x1] ss:$4 sm:$0xff] %v602_v62  ;;  %v575_v56 = vadd.f32 %v1764_v50, %v565_v7  ;;  %v681_v45 = vrot.slane %v680_v39, 4  ;;  %v742_v26 = vrot.slane %v1676_v35, 5  ;;  %v1284_v16 = vrot.slane %v1672_v20, 9 }
 0x238   :  { %752 = vst [vmem:[#allocation1 + $0x11] ss:$2 sm:$0xff] %v727_v29  ;;  %v678_v47 = vrot.slane %v677_v51, 1  ;;  %v1199_v8 = vsel %vm179_vm10, %v672_v24, %v1198_v32  ;;  %v739_v35 = vsel %vm1794_vm9, %v1283_v22, %v738_v10  ;;  %v1304_v24 = vld [vmem:[%s1957_s3 + $0x20] sm:$0xff]  ;;  %v734_v32 = vrot.slane %v1607_v30, 5 }
 0x239   :  { %v581_v33 = vmax.f32 %v575_v56, 0.0  ;;  %v682_v23 = vmax.f32 %v680_v39, %v681_v45  ;;  %v1277_v39 = vrot.slane %v1429_v31, 9  ;;  %v743_v34 = vsel %vm1794_vm9, %v1284_v16, %v742_v26  ;;  %1090 = vmatpush.msra.mxu1 %v1304_v24 }
 0x23a   :  { %v679_v54 = vmax.f32 %v677_v51, %v678_v47  ;;  %v1278_v56 = vrot.slane %v1476_v53, 9  ;;  %v730_v47 = vrot.slane %v1575_v63, 5  ;;  %v1282_v63 = vrot.slane %v1603_v28, 9 }
 0x23b   :  { %v603_v6 = vrot.slane %v581_v33, 2  ;;  %v604_v50 = vrot.slane %v581_v33, 4  ;;  %v605_v0 = vrot.slane %v581_v33, 6  ;;  %637 = vst [vmem:[#allocation1 + $0x2] ss:$4 sm:$0xff] %v581_v33  ;;  %v683_v43 = vrot.slane %v682_v23, 2 }
 0x23c   :  { %v634_v62 = vld.sshfl [vmem:[#allocation1 + $0x20] sm:$0xff pattern:$0x73625140]  ;;  %750 = vst [vmem:[#allocation1 + $0x10] ss:$2 sm:$0xff] %v723_v11  ;;  %v1201_v19 = vsel %vm1200_vm11, %v679_v54, %v1199_v8  ;;  %v715_v57 = vsel %vm1794_vm9, %v1277_v39, %v714_v17  ;;  %v719_v8 = vsel %vm1794_vm9, %v1278_v56, %v718_v52 }
 0x23d   :  { %639 = vst [vmem:[#allocation1 + $0x20] ss:$4 sm:$0xff] %v603_v6  ;;  %v684_v14 = vmax.f32 %v682_v23, %v683_v43  ;;  %v687_v4 = vsel %vm651_vm5, %v634_v62, -inf  ;;  %v1281_v6 = vrot.slane %v1570_v59, 9 }
 0x23e   :  { %640 = vst [vmem:[#allocation1 + $0x21] ss:$4 sm:$0xff] %v604_v50  ;;  %v688_v7 = vrot.slane %v687_v4, 4 }
 0x23f   :  { %641 = vst [vmem:[#allocation1 + $0x22] ss:$4 sm:$0xff] %v605_v0  ;;  %v685_v51 = vrot.slane %v684_v14, 1  ;;  %v731_v30 = vsel %vm1794_vm9, %v1281_v6, %v730_v47  ;;  %v865_v47 = vrot.slane %v1480_v55, 6 }
 0x240   :  { %758 = vst [vmem:[#allocation1 + $0x30] ss:$2 sm:$0xff] %v739_v35  ;;  %v689_v29 = vmax.f32 %v687_v4, %v688_v7 }
 0x241   :  { %760 = vst [vmem:[#allocation1 + $0x31] ss:$2 sm:$0xff] %v743_v34  ;;  %v686_v45 = vmax.f32 %v684_v14, %v685_v51 }
 0x242   :  { %v638_v33 = vld.sshfl [vmem:[#allocation1] sm:$0xff pattern:$0x73625140]  ;;  %v690_v23 = vrot.slane %v689_v29, 2 }
 0x243   :  { %746 = vst [vmem:[#allocation1] ss:$2 sm:$0xff] %v715_v57  ;;  %v762_v11 = vld.sshfl [vmem:[#allocation1 + $0x10] sm:$0xff pattern:$0x75316420]  ;;  %v1202_v10 = vsel %vm181_vm12, %v686_v45, %v1201_v19  ;;  %v694_v54 = vsel %vm651_vm5, %v638_v33, -inf  ;;  %v735_v19 = vsel %vm1794_vm9, %v1282_v63, %v734_v32 }
 0x244   :  { %748 = vst [vmem:[#allocation1 + $0x1] ss:$2 sm:$0xff] %v719_v8  ;;  %v691_v50 = vmax.f32 %v689_v29, %v690_v23  ;;  %v695_v0 = vrot.slane %v694_v54, 4  ;;  %v1978_v45 = vrot.slane %v1476_v53, 6 }
 0x245   :  { %806 = vst [vmem:[#allocation1 + $0x10] ss:$2 sm:$0xff] %v1505_v5 }
 0x246   :  { %v642_v43 = vld.sshfl [vmem:[#allocation1 + $0x20] sm:$0xff pattern:$0x73625140]  ;;  %808 = vst [vmem:[#allocation1 + $0x11] ss:$2 sm:$0xff] %v1538_v25  ;;  %v692_v26 = vrot.slane %v691_v50, 1  ;;  %v696_v62 = vmax.f32 %v694_v54, %v695_v0 }
 0x247   :  { %754 = vst [vmem:[#allocation1 + $0x20] ss:$2 sm:$0xff] %v731_v30  ;;  %v701_v22 = vsel %vm651_vm5, %v642_v43, -inf  ;;  %v864_v57 = vrot.slane %v1978_v45, 4 }
 0x248   :  { %756 = vst [vmem:[#allocation1 + $0x21] ss:$2 sm:$0xff] %v735_v19  ;;  %v764_v14 = vld.sshfl [vmem:[#allocation1 + $0x30] sm:$0xff pattern:$0x75316420]  ;;  %v693_v4 = vmax.f32 %v691_v50, %v692_v26  ;;  %v702_v17 = vrot.slane %v701_v22, 4 }
 0x249   :  { %814 = vst [vmem:[#allocation1 + $0x30] ss:$2 sm:$0xff] %v1636_v13  ;;  %v697_v16 = vrot.slane %v696_v62, 2  ;;  %v866_v55 = vsel %vm1453_vm4, %v864_v57, %v865_v47 }
 0x24a   :  { %816 = vst [vmem:[#allocation1 + $0x31] ss:$2 sm:$0xff] %v1672_v20  ;;  %v703_v7 = vmax.f32 %v701_v22, %v702_v17  ;;  %v1204_v52 = vsel %vm1203_vm13, %v693_v4, %v1202_v10 }
 0x24b   :  { %v761_v35 = vld.sshfl [vmem:[#allocation1] sm:$0xff pattern:$0x75316420]  ;;  %v698_v24 = vmax.f32 %v696_v62, %v697_v16 }
 0x24c   :  { %1286 = vmatmul.msk.f32.vlgmr.msrb.gmra.mxu1 %vm304_vm0, %v761_v35  ;;  %802 = vst [vmem:[#allocation1] ss:$2 sm:$0xff] %v1429_v31  ;;  %v704_v27 = vrot.slane %v703_v7, 2  ;;  %v1318_v35 = vld [vmem:[%s1959_s5] ss:$0 sm:$0xff]  ;;  %s1347_s5 = smov 16  }
 0x24d   :  { %804 = vst [vmem:[#allocation1 + $0x1] ss:$2 sm:$0xff] %v1476_v53  ;;  %v818_v51 = vld.sshfl [vmem:[#allocation1 + $0x10] sm:$0xff pattern:$0x75316420]  ;;  %v699_v39 = vrot.slane %v698_v24, 1 }
 0x24e   :  { %891 = vst [vmem:[#allocation1 + $0x10] ss:$2 sm:$0xff] %v1526_v21  ;;  %v705_v34 = vmax.f32 %v703_v7, %v704_v27 }
 0x24f   :  { %v763_v29 = vld.sshfl [vmem:[#allocation1 + $0x20] sm:$0xff pattern:$0x75316420]  ;;  %893 = vst [vmem:[#allocation1 + $0x11] ss:$2 sm:$0xff] %v1559_v48  ;;  %v700_v56 = vmax.f32 %v698_v24, %v699_v39 }
 0x250   :  { %810 = vst [vmem:[#allocation1 + $0x20] ss:$2 sm:$0xff] %v1570_v59  ;;  %v706_v32 = vrot.slane %v705_v34, 1 }
 0x251   :  { %812 = vst [vmem:[#allocation1 + $0x21] ss:$2 sm:$0xff] %v1603_v28  ;;  %v820_v33 = vld.sshfl [vmem:[#allocation1 + $0x30] sm:$0xff pattern:$0x75316420]  ;;  %v1205_v23 = vsel %vm183_vm14, %v700_v56, %v1204_v52 }
 0x252   :  { %899 = vst [vmem:[#allocation1 + $0x30] ss:$2 sm:$0xff] %v1660_v9  ;;  %v707_v21 = vmax.f32 %v705_v34, %v706_v32 }
 0x253   :  { %901 = vst [vmem:[#allocation1 + $0x31] ss:$2 sm:$0xff] %v1691_v2  ;;  %v1979_v2 = vsel %vm1444_vm3, %v1519_v15, %v1516_v12  ;;  %v1982_v12 = vsel %vm1444_vm3, %v1684_v1, %v1681_v58 }
 0x254   :  { %1287 = vmatmul.msk.f32.gmra.mxu1 %vm304_vm0, %v762_v11  ;;  %v817_v48 = vld.sshfl [vmem:[#allocation1] sm:$0xff pattern:$0x75316420]  ;;  %v1859_v8 = vsel %vm1206_vm15, %v707_v21, %v1205_v23  ;;  %v1980_v11 = vsel %vm1444_vm3, %v1552_v42, %v1549_v36  ;;  %v1983_v36 = vsel %vm1444_vm3, %v1458_v44, %v1451_v40  ;;  %v1984_v42 = vsel %vm1444_vm3, %v1489_v61, %v1487_v60  ;;  %v1988_v40 = vld [vmem:[#allocation8_spill] sm:$0xff] }
 0x255   :  { %1290 = vmatmul.msk.f32.vlgmr.msra.gmra.mxu2 %vm304_vm0, %v817_v48  ;;  %887 = vst [vmem:[#allocation1] ss:$2 sm:$0xff] %v1465_v49  ;;  %v1981_v49 = vsel %vm1444_vm3, %v1653_v46, %v1650_v38  ;;  %v1985_v38 = vld [vmem:[#allocation6_spill] sm:$0xff]  ;;  %v1986_v46 = vld [vmem:[#allocation5_spill] sm:$0xff]  ;;  %v1989_v44 = vld [vmem:[#allocation7_spill] sm:$0xff] }
 0x256   :  { %889 = vst [vmem:[#allocation1 + $0x1] ss:$2 sm:$0xff] %v866_v55  ;;  %v903_v10 = vld.sshfl [vmem:[#allocation1 + $0x10] sm:$0xff pattern:$0x75316420]  ;;  %v1987_v58 = vsel %vm1444_vm3, %v1985_v38, %v1986_v46  ;;  %v1990_v1 = vsel %vm1444_vm3, %v1988_v40, %v1989_v44 }
 0x257   :  { %970 = vst [vmem:[#allocation1 + $0x10] ss:$2 sm:$0xff] %v1979_v2 }
 0x258   :  { %v819_v9 = vld.sshfl [vmem:[#allocation1 + $0x20] sm:$0xff pattern:$0x75316420]  ;;  %972 = vst [vmem:[#allocation1 + $0x11] ss:$2 sm:$0xff] %v1980_v11 }
 0x259   :  { %895 = vst [vmem:[#allocation1 + $0x20] ss:$2 sm:$0xff] %v1592_v18 }
 0x25a   :  { %897 = vst [vmem:[#allocation1 + $0x21] ss:$2 sm:$0xff] %v1625_v3  ;;  %v905_v41 = vld.sshfl [vmem:[#allocation1 + $0x30] sm:$0xff pattern:$0x75316420] }
 0x25b   :  { %978 = vst [vmem:[#allocation1 + $0x30] ss:$2 sm:$0xff] %v1981_v49 }
 0x25c   :  { %1288 = vmatmul.msk.f32.gmra.mxu1 %vm304_vm0, %v763_v29  ;;  %980 = vst [vmem:[#allocation1 + $0x31] ss:$2 sm:$0xff] %v1982_v12 }
 0x25d   :  { %1291 = vmatmul.msk.f32.gmra.mxu2 %vm304_vm0, %v818_v51  ;;  %v902_v15 = vld.sshfl [vmem:[#allocation1] sm:$0xff pattern:$0x75316420] }
 0x25e   :  { %1295 = vmatmul.msk.f32.vlgmr.msrb.gmra.mxu3 %vm304_vm0, %v902_v15  ;;  %966 = vst [vmem:[#allocation1] ss:$2 sm:$0xff] %v1983_v36 }
 0x25f   :  { %968 = vst [vmem:[#allocation1 + $0x1] ss:$2 sm:$0xff] %v1984_v42  ;;  %v982_v18 = vld.sshfl [vmem:[#allocation1 + $0x10] sm:$0xff pattern:$0x75316420] }
 0x260   :  { %1029 = vst.sshfl [vmem:[#allocation1 + $0x10] sm:$0xff pattern:$0x75316420] %v1476_v53 }
 0x261   :  { %v904_v3 = vld.sshfl [vmem:[#allocation1 + $0x20] sm:$0xff pattern:$0x75316420] }
 0x262   :  { %974 = vst [vmem:[#allocation1 + $0x20] ss:$2 sm:$0xff] %v1987_v58 }
 0x263   :  { %976 = vst [vmem:[#allocation1 + $0x21] ss:$2 sm:$0xff] %v1990_v1  ;;  %v984_v54 = vld.sshfl [vmem:[#allocation1 + $0x30] sm:$0xff pattern:$0x75316420] }
 0x264   :  { %1289 = vmatmul.msk.f32.gmra.mxu1 %vm304_vm0, %v764_v14  ;;  %1035 = vst.sshfl [vmem:[#allocation1 + $0x30] sm:$0xff pattern:$0x75316420] %v1538_v25 }
 0x265   :  { %1292 = vmatmul.msk.f32.gmra.mxu2 %vm304_vm0, %v819_v9 }
 0x266   :  { %1296 = vmatmul.msk.f32.gmra.mxu3 %vm304_vm0, %v903_v10  ;;  %v981_v53 = vld.sshfl [vmem:[#allocation1] sm:$0xff pattern:$0x75316420] }
 0x267   :  { %1300 = vmatmul.msk.f32.vlgmr.msrb.gmra.mxu0 %vm304_vm0, %v981_v53  ;;  %1026 = vst.sshfl [vmem:[#allocation1] sm:$0xff pattern:$0x75316420] %v1429_v31  ;;  %v1031_v60 = vld [vmem:[#allocation1 + $0x11] ss:$2 sm:$0xff] }
 0x268   :  { %1040 = vst.sshfl [vmem:[#allocation1 + $0x10] sm:$0xff pattern:$0x75316420] %v1603_v28 }
 0x26a   :  { %v983_v37 = vld.sshfl [vmem:[#allocation1 + $0x20] sm:$0xff pattern:$0x75316420] }
 0x26b   :  { %1032 = vst.sshfl [vmem:[#allocation1 + $0x20] sm:$0xff pattern:$0x75316420] %v1505_v5  ;;  %v1037_v61 = vld [vmem:[#allocation1 + $0x31] ss:$2 sm:$0xff] }
 0x26c   :  { %1044 = vst.sshfl [vmem:[#allocation1 + $0x30] sm:$0xff pattern:$0x75316420] %v1672_v20 }
 0x26d   :  { %1293 = vmatmul.msk.f32.gmra.mxu2 %vm304_vm0, %v820_v33 }
 0x26e   :  { %1297 = vmatmul.msk.f32.gmra.mxu3 %vm304_vm0, %v904_v3  ;;  %v1028_v25 = vld [vmem:[#allocation1 + $0x1] ss:$2 sm:$0xff] }
 0x26f   :  { %1301 = vmatmul.msk.f32.gmra.mxu0 %vm304_vm0, %v982_v18  ;;  %v1041_v6 = vld [vmem:[#allocation1 + $0x11] ss:$2 sm:$0xff]  ;;  %1038 = vst.sshfl [vmem:[#allocation1] sm:$0xff pattern:$0x75316420] %v1570_v59 }
 0x270   :  { %1054 = vst [vmem:[#allocation1 + $0x11] ss:$2 sm:$0xff] %v1037_v61 }
 0x271   :  { %1048 = vst [vmem:[#allocation1] ss:$2 sm:$0xff] %v1028_v25 }
 0x272   :  { %v1034_v31 = vld [vmem:[#allocation1 + $0x21] ss:$2 sm:$0xff] }
 0x273   :  { %v1045_v28 = vld [vmem:[#allocation1 + $0x31] ss:$2 sm:$0xff]  ;;  %1052 = vst [vmem:[#allocation1 + $0x10] ss:$2 sm:$0xff] %v1034_v31 }
 0x274   :  { %1062 = vst [vmem:[#allocation1 + $0x31] ss:$2 sm:$0xff] %v1045_v28 }
 0x275   :  { %1042 = vst.sshfl [vmem:[#allocation1 + $0x20] sm:$0xff pattern:$0x75316420] %v1636_v13 }
 0x276   :  { %1298 = vmatmul.msk.f32.gmra.mxu3 %vm304_vm0, %v905_v41  ;;  %v1039_v5 = vld [vmem:[#allocation1 + $0x1] ss:$2 sm:$0xff] }
 0x277   :  { %1302 = vmatmul.msk.f32.gmra.mxu0 %vm304_vm0, %v983_v37  ;;  %1050 = vst [vmem:[#allocation1 + $0x1] ss:$2 sm:$0xff] %v1031_v60 }
 0x278   :  { %1056 = vst [vmem:[#allocation1 + $0x20] ss:$2 sm:$0xff] %v1039_v5 }
 0x27a   :  { %v1064_v59 = vld.sshfl [vmem:[#allocation1 + $0x10] sm:$0xff pattern:$0x75316420] }
 0x27c   :  { %v1043_v20 = vld [vmem:[#allocation1 + $0x21] ss:$2 sm:$0xff] }
 0x27d   :  { %1058 = vst [vmem:[#allocation1 + $0x21] ss:$2 sm:$0xff] %v1041_v6 }
 0x27e   :  { %v1063_v50 = vld.sshfl [vmem:[#allocation1] sm:$0xff pattern:$0x75316420]  ;;  %1060 = vst [vmem:[#allocation1 + $0x30] ss:$2 sm:$0xff] %v1043_v20 }
 0x27f   :  { %1303 = vmatmul.msk.f32.gmra.mxu0 %vm304_vm0, %v984_v54  ;;  %1305 = vmatmul.msk.f32.vlgmr.msra.gmra.mxu1 %vm304_vm0, %v1063_v50 }
 0x284   :  { %v1065_v0 = vld.sshfl [vmem:[#allocation1 + $0x20] sm:$0xff pattern:$0x75316420] }
 0x285   :  { %v1066_v13 = vld.sshfl [vmem:[#allocation1 + $0x30] sm:$0xff pattern:$0x75316420] }
 0x287   :  { %1306 = vmatmul.msk.f32.gmra.mxu1 %vm304_vm0, %v1064_v59 }
 0x28f   :  { %1307 = vmatmul.msk.f32.gmra.mxu1 %vm304_vm0, %v1065_v0 }
 0x297   :  { %1308 = vmatmul.msk.f32.gmra.mxu1 %vm304_vm0, %v1066_v13 }
 0x2c9   :  { %v790_v63 = vpop.f32.mrf.mxu1 }
 0x2d1   :  { %v793_v30 = vpop.f32.mrf.mxu1 }
 0x2d8   :  { %v846_v26 = vpop.f32.mrf.mxu2 }
 0x2d9   :  { %v796_v43 = vpop.f32.mrf.mxu1  ;;  %v847_v14 = vadd.f32 %v846_v26, %v790_v63 }
 0x2e0   :  { %v849_v4 = vpop.f32.mrf.mxu2 }
 0x2e1   :  { %v931_v62 = vpop.f32.mrf.mxu3  ;;  %v799_v22 = vpop.f32.mrf.mxu1  ;;  %v850_v27 = vadd.f32 %v849_v4, %v793_v30 }
 0x2e2   :  { %v943_v17 = vadd.f32 %v931_v62, %v847_v14 }
 0x2e4   :  { %v1010_v19 = vpop.f32.mrf.mxu0 }
 0x2e5   :  { %v1022_v7 = vadd.f32 %v1010_v19, %v943_v17 }
 0x2e8   :  { %v852_v39 = vpop.f32.mrf.mxu2 }
 0x2e9   :  { %v934_v16 = vpop.f32.mrf.mxu3  ;;  %v853_v33 = vadd.f32 %v852_v39, %v796_v43 }
 0x2ea   :  { %v944_v34 = vadd.f32 %v934_v16, %v850_v27 }
 0x2ec   :  { %v1013_v52 = vpop.f32.mrf.mxu0 }
 0x2ed   :  { %v1023_v57 = vadd.f32 %v1013_v52, %v944_v34 }
 0x2f0   :  { %v855_v11 = vpop.f32.mrf.mxu2 }
 0x2f1   :  { %v937_v56 = vpop.f32.mrf.mxu3  ;;  %v856_v3 = vadd.f32 %v855_v11, %v799_v22 }
 0x2f2   :  { %v945_v10 = vadd.f32 %v937_v56, %v853_v33 }
 0x2f4   :  { %v1016_v23 = vpop.f32.mrf.mxu0 }
 0x2f5   :  { %v1024_v12 = vadd.f32 %v1016_v23, %v945_v10 }
 0x2f9   :  { %v940_v15 = vpop.f32.mrf.mxu3 }
 0x2fa   :  { %v946_v1 = vadd.f32 %v940_v15, %v856_v3 }
 0x2fc   :  { %v1092_v24 = vpop.f32.mrf.mxu1  ;;  %v1019_v60 = vpop.f32.mrf.mxu0 }
 0x2fd   :  { %v1104_v51 = vadd.f32 %v1092_v24, %v1022_v7  ;;  %v1025_v5 = vadd.f32 %v1019_v60, %v946_v1 }
 0x2ff   :  { %v1112_v29 = vadd.f32 %v1318_v35, %v1104_v51 }
 0x301   :  { %v1116_v45 = vmax.f32 %v1112_v29, 0.0 }
 0x303   :  { %v1124_v47 = vrot.slane %v1116_v45, 4  ;;  %v1133_v55 = vsel %vm1132_vm2, %v1116_v45, -inf }
 0x304   :  { %v1095_v32 = vpop.f32.mrf.mxu1  ;;  %v1134_v41 = vrot.slane %v1133_v55, 4 }
 0x305   :  { %v1140_v21 = vsel %vm1132_vm2, %v1124_v47, -inf  ;;  %v1105_v48 = vadd.f32 %v1095_v32, %v1023_v57 }
 0x306   :  { %v1141_v2 = vrot.slane %v1140_v21, 4  ;;  %v1135_v58 = vmax.f32 %v1133_v55, %v1134_v41 }
 0x307   :  { %v1113_v9 = vadd.f32 %v1318_v35, %v1105_v48 }
 0x308   :  { %v1142_v36 = vmax.f32 %v1140_v21, %v1141_v2  ;;  %v1136_v31 = vrot.slane %v1135_v58, 2 }
 0x309   :  { %v1117_v49 = vmax.f32 %v1113_v9, 0.0 }
 0x30a   :  { %v1143_v37 = vrot.slane %v1142_v36, 2  ;;  %v1137_v43 = vmax.f32 %v1135_v58, %v1136_v31 }
 0x30b   :  { %v1125_v42 = vrot.slane %v1117_v49, 4  ;;  %v1147_v18 = vsel %vm1132_vm2, %v1117_v49, -inf }
 0x30c   :  { %v1148_v38 = vrot.slane %v1147_v18, 4  ;;  %v1098_v46 = vpop.f32.mrf.mxu1  ;;  %v1144_v20 = vmax.f32 %v1142_v36, %v1143_v37  ;;  %v1138_v24 = vrot.slane %v1137_v43, 1 }
 0x30d   :  { %v1154_v40 = vsel %vm1132_vm2, %v1125_v42, -inf  ;;  %v1106_v44 = vadd.f32 %v1098_v46, %v1024_v12 }
 0x30e   :  { %v1149_v54 = vmax.f32 %v1147_v18, %v1148_v38  ;;  %v1155_v53 = vrot.slane %v1154_v40, 4  ;;  %v1145_v14 = vrot.slane %v1144_v20, 1  ;;  %v1139_v23 = vmax.f32 %v1137_v43, %v1138_v24 }
 0x30f   :  { %v1114_v61 = vadd.f32 %v1318_v35, %v1106_v44 }
 0x310   :  { %v1150_v25 = vrot.slane %v1149_v54, 2  ;;  %v1156_v6 = vmax.f32 %v1154_v40, %v1155_v53  ;;  %v1146_v34 = vmax.f32 %v1144_v20, %v1145_v14 }
 0x311   :  { %v1118_v28 = vmax.f32 %v1114_v61, 0.0 }
 0x312   :  { %v1157_v50 = vrot.slane %v1156_v6, 2  ;;  %v1151_v13 = vmax.f32 %v1149_v54, %v1150_v25  ;;  %v1217_v55 = vsel %vm1197_vm8, %v1146_v34, %v1139_v23 }
 0x313   :  { %v1126_v59 = vrot.slane %v1118_v28, 4  ;;  %v1161_v0 = vsel %vm1132_vm2, %v1118_v28, -inf }
 0x314   :  { %v1162_v63 = vrot.slane %v1161_v0, 4  ;;  %v1101_v30 = vpop.f32.mrf.mxu1  ;;  %v1158_v4 = vmax.f32 %v1156_v6, %v1157_v50  ;;  %v1152_v16 = vrot.slane %v1151_v13, 1 }
 0x315   :  { %v1168_v26 = vsel %vm1132_vm2, %v1126_v59, -inf  ;;  %v1107_v62 = vadd.f32 %v1101_v30, %v1025_v5 }
 0x316   :  { %v1163_v19 = vmax.f32 %v1161_v0, %v1162_v63  ;;  %v1169_v22 = vrot.slane %v1168_v26, 4  ;;  %v1159_v29 = vrot.slane %v1158_v4, 1  ;;  %v1153_v57 = vmax.f32 %v1151_v13, %v1152_v16 }
 0x317   :  { %v1115_v17 = vadd.f32 %v1318_v35, %v1107_v62 }
 0x318   :  { %v1164_v7 = vrot.slane %v1163_v19, 2  ;;  %v1170_v52 = vmax.f32 %v1168_v26, %v1169_v22  ;;  %v1160_v10 = vmax.f32 %v1158_v4, %v1159_v29  ;;  %v1218_v49 = vsel %vm179_vm10, %v1153_v57, %v1217_v55 }
 0x319   :  { %v1119_v27 = vmax.f32 %v1115_v17, 0.0  ;;  %vm1227_vm10 = vcmask 130048  }
 0x31a   :  { %v1165_v51 = vmax.f32 %v1163_v19, %v1164_v7  ;;  %v1171_v39 = vrot.slane %v1170_v52, 2  ;;  %v1219_v42 = vsel %vm1200_vm11, %v1160_v10, %v1218_v49 }
 0x31b   :  { %v1127_v56 = vrot.slane %v1119_v27, 4  ;;  %v1175_v45 = vsel %vm1132_vm2, %v1119_v27, -inf }
 0x31c   :  { %v1166_v47 = vrot.slane %v1165_v51, 1  ;;  %v1172_v32 = vmax.f32 %v1170_v52, %v1171_v39  ;;  %v1176_v33 = vrot.slane %v1175_v45, 4 }
 0x31d   :  { %v1182_v21 = vsel %vm1132_vm2, %v1127_v56, -inf }
 0x31e   :  { %v1177_v35 = vmax.f32 %v1175_v45, %v1176_v33  ;;  %v1183_v48 = vrot.slane %v1182_v21, 4  ;;  %v1173_v2 = vrot.slane %v1172_v32, 1  ;;  %v1167_v9 = vmax.f32 %v1165_v51, %v1166_v47 }
 0x320   :  { %v1178_v11 = vrot.slane %v1177_v35, 2  ;;  %v1184_v41 = vmax.f32 %v1182_v21, %v1183_v48  ;;  %v1174_v36 = vmax.f32 %v1172_v32, %v1173_v2  ;;  %v1220_v38 = vsel %vm181_vm12, %v1167_v9, %v1219_v42 }
 0x322   :  { %v1179_v12 = vmax.f32 %v1177_v35, %v1178_v11  ;;  %v1185_v15 = vrot.slane %v1184_v41, 2  ;;  %v1221_v40 = vsel %vm1203_vm13, %v1174_v36, %v1220_v38 }
 0x324   :  { %v1180_v18 = vrot.slane %v1179_v12, 1  ;;  %v1186_v3 = vmax.f32 %v1184_v41, %v1185_v15 }
 0x326   :  { %v1181_v46 = vmax.f32 %v1179_v12, %v1180_v18  ;;  %v1187_v58 = vrot.slane %v1186_v3, 1 }
 0x328   :  { %v1188_v44 = vmax.f32 %v1186_v3, %v1187_v58  ;;  %v1222_v1 = vsel %vm183_vm14, %v1181_v46, %v1221_v40 }
 0x32a   :  { %v1223_v54 = vsel %vm1206_vm15, %v1188_v44, %v1222_v1 }
 0x32b   :  { %1224 = vrot.lane.b32.xlu2 %v1223_v54, %s1347_s5 }
 0x385   :  { %v1225_v53 = vpop.permute.xlu2 %1224 }
 0x386   :  { %v1228_v60 = vsel %vm1227_vm10, %v1859_v8, %v1225_v53 }
 0x387   :  { %v1230_v37 = vsel %vm1229_vm1, %v1228_v60, 0.0 }
 0x388   :  { %1231 = vst [vmem:[#allocation2] sm:$0xff] %v1230_v37 }
 0x389   :  { %1242 = dma.vmem_to_hbm [thread:$0]  %s1238_s9, 128, %s1240_s12, [#allocation3]  }
 0x38a   :  { %1343 = dma.done.wait [#allocation3], 128  }
 0x38b   :  { %1344 = vsyncadd [#allocation3], 4294967168 }
 0x38c   :  { %1247 = vsyncpa [#allocation3], 1 }

</bundles_post_ra>
